<compile_context>
chip_gen: v7x
topology: tpu7x:2x2x1
jax: 0.10.0
libtpu: 0.0.40
codegen_flags: <defaults>
</compile_context>

<pallas_src>
import functools

import numpy as np
import jax
import jax.numpy as jnp
from jax.experimental import pallas as pl
from jax.experimental.pallas import tpu as pltpu


# ---------------------------------------------------------------------------
# Fused generator kernel: concat -> Conv3x3 -> ReLU -> Conv3x3, all in VMEM
# ---------------------------------------------------------------------------
def _g_fused_kernel(x0_ref, z_ref, masks_ref, w1_ref, b1_ref, w2_ref, b2_ref,
                    o_ref, *, B, H, W, z_std):
    HW = H * W
    M = B * HW

    # Build channels-major flat activation (C_in, M) with column order
    # col = b*HW + y*W + x.  The z_std scale and the [x0, Z] channel concat
    # are fused here instead of being separate XLA ops in the wrapper.
    z = z_ref[...] * jnp.float32(z_std)                      # (B, zc, HW)
    xz = jnp.concatenate(
        [jnp.concatenate([x0_ref[b], z[b]], axis=0) for b in range(B)],
        axis=1)                                               # (C_in, M)

    masks = masks_ref[...]                                    # (9, M), float32 0/1

    def conv3x3(inp, w_ref, b_ref):
        # inp: (c_in, M); w_ref: (c_out, 9*c_in); b_ref: (c_out, 1)
        taps = []
        for t in range(9):                                    # static unroll
            dy, dx = t // 3 - 1, t % 3 - 1
            delta = dy * W + dx
            if delta == 0:
                taps.append(inp)                              # center: no roll/mask
            else:
                rolled = pltpu.roll(inp, shift=(-delta) % M, axis=1)
                taps.append(rolled * masks[t:t + 1, :])       # zero wrapped cols
        src = jnp.concatenate(taps, axis=0)                   # (9*c_in, M)
        return jnp.dot(w_ref[...], src,
                       preferred_element_type=jnp.float32) + b_ref[...]

    h = jnp.maximum(conv3x3(xz, w1_ref, b1_ref), 0.0)          # (hidden, M)
    out = conv3x3(h, w2_ref, b2_ref)                           # (C_out, M)

    # Split the flat lane axis back per batch (256-lane aligned slices).
    for b in range(B):
        o_ref[b, :, :] = out[:, b * HW:(b + 1) * HW]


# ---------------------------------------------------------------------------
# Trace-time constant: per-tap boundary masks for the flat (b, y, x) lane axis
# ---------------------------------------------------------------------------
def _boundary_masks(B, H, W):
    M = B * H * W
    col = np.arange(M)
    x = col % W
    y = (col // W) % H
    m = np.zeros((9, M), np.float32)
    for t in range(9):
        dy, dx = t // 3 - 1, t % 3 - 1
        ok = (y + dy >= 0) & (y + dy < H) & (x + dx >= 0) & (x + dx < W)
        m[t] = ok.astype(np.float32)
    return jnp.asarray(m)


# ---------------------------------------------------------------------------
# One-time param preparation (outside the per-call / jitted path)
# ---------------------------------------------------------------------------
def prepare_g_params(raw):
    w1, b1, w2, b2 = raw["w1"], raw["b1"], raw["w2"], raw["b2"]
    hidden, in_c = w1.shape[0], w1.shape[1]
    out_c = w2.shape[0]
    # (O, I, kh, kw) -> (O, kh, kw, I) -> (O, 9*I): row order of the in-kernel
    # tap stack is (tap, channel), tap = kh*3 + kw.
    return {
        "w1": jnp.asarray(w1).transpose(0, 2, 3, 1).reshape(hidden, 9 * in_c),
        "b1": jnp.asarray(b1).reshape(hidden, 1),
        "w2": jnp.asarray(w2).transpose(0, 2, 3, 1).reshape(out_c, 9 * hidden),
        "b2": jnp.asarray(b2).reshape(out_c, 1),
    }


# ---------------------------------------------------------------------------
# Generator apply + G_wrapper.forward
# ---------------------------------------------------------------------------
def g_apply(x0, z_raw, prepped, z_std):
    B, C0, H, W = x0.shape
    zc = z_raw.shape[1]
    HW = H * W
    Cin = C0 + zc
    Cout = prepped["w2"].shape[0]
    assert prepped["w1"].shape[1] == 9 * Cin

    masks = _boundary_masks(B, H, W)                           # constant (9, M)

    # Grid-less: whole problem (< 1 MiB) lives in VMEM on v5e/v6e/v7x.
    # TODO(synk): if B*H*W grows to many thousands, add a 128-multiple lane
    # grid with dimension_semantics=("parallel",) to use both v7x TensorCores.
    out = pl.pallas_call(
        functools.partial(_g_fused_kernel, B=B, H=H, W=W, z_std=float(z_std)),
        out_shape=jax.ShapeDtypeStruct((B, Cout, HW), jnp.float32),
        in_specs=[pl.BlockSpec(memory_space=pltpu.MemorySpace.VMEM)] * 7,
        out_specs=pl.BlockSpec(memory_space=pltpu.MemorySpace.VMEM),
    )(x0.reshape(B, C0, HW), z_raw.reshape(B, zc, HW), masks,
      prepped["w1"], prepped["b1"], prepped["w2"], prepped["b2"])

    return out.reshape(B, Cout, H, W)                          # free reshape (NCHW)


def g_wrapper_forward(x0, key, prepped, *, zc, z_std):
    B, _, H, W = x0.shape
    # Keyed noise kept outside the kernel for bit-exact reproducibility with
    # the reference; the z_std scale and channel concat happen in-kernel.
    z_raw = jax.random.normal(key, (B, zc, H, W), jnp.float32)
    return g_apply(x0, z_raw, prepped, z_std)


def init_g_params(key, in_c, hidden, out_c):
    k1, k2 = jax.random.split(key)
    w1 = jax.random.normal(k1, (hidden, in_c, 3, 3), jnp.float32) * (2.0 / (in_c * 9)) ** 0.5
    b1 = jnp.zeros((hidden,), jnp.float32)
    w2 = jax.random.normal(k2, (out_c, hidden, 3, 3), jnp.float32) * (1.0 / (hidden * 9)) ** 0.5
    b2 = jnp.zeros((out_c,), jnp.float32)
    return {"w1": w1, "b1": b1, "w2": w2, "b2": b2}


# pure-JAX reference of the generator (for the correctness check)
def _g_apply_ref(xz, raw):
    dn = ("NCHW", "OIHW", "NCHW")
    h = jax.lax.conv_general_dilated(
        xz, raw["w1"], window_strides=(1, 1), padding="SAME",
        dimension_numbers=dn, precision=jax.lax.Precision.HIGHEST)
    h = jnp.maximum(h + raw["b1"][None, :, None, None], 0.0)
    out = jax.lax.conv_general_dilated(
        h, raw["w2"], window_strides=(1, 1), padding="SAME",
        dimension_numbers=dn, precision=jax.lax.Precision.HIGHEST)
    return out + raw["b2"][None, :, None, None]


if __name__ == "__main__":
    key = jax.random.PRNGKey(0)
    kx, kp, kz = jax.random.split(key, 3)

    B, C0, H, W = 2, 4, 16, 16
    zc, z_std = 4, 0.1
    hidden = 32

    x0 = jax.random.normal(kx, (B, C0, H, W), jnp.float32)
    raw_params = init_g_params(kp, C0 + zc, hidden, C0)
    prepped = prepare_g_params(raw_params)          # one-time re-layout, outside jit

    fwd = jax.jit(functools.partial(g_wrapper_forward, zc=zc, z_std=z_std))
    out = fwd(x0, kz, prepped)
    jax.block_until_ready(out)

    assert out.shape == (B, C0, H, W), out.shape
    assert out.dtype == jnp.float32

    # correctness: rebuild the same noisy input and compare with a lax.conv reference
    Z = jax.random.normal(kz, (B, zc, H, W), jnp.float32) * jnp.float32(z_std)
    ref = _g_apply_ref(jnp.concatenate([x0, Z], axis=1), raw_params)
    assert jnp.allclose(out, ref, rtol=1e-2, atol=1e-3), float(jnp.max(jnp.abs(out - ref)))

    print("KERNEL_OK")
</pallas_src>

<mosaic_0001>
module attributes {stable_mosaic.version = 11 : i64} {
  func.func @_g_fused_kernel(%arg0: memref<2x4x256xf32, #tpu.memory_space<vmem>>, %arg1: memref<2x4x256xf32, #tpu.memory_space<vmem>>, %arg2: memref<9x512xf32, #tpu.memory_space<vmem>>, %arg3: memref<32x72xf32, #tpu.memory_space<vmem>>, %arg4: memref<32x1xf32, #tpu.memory_space<vmem>>, %arg5: memref<4x288xf32, #tpu.memory_space<vmem>>, %arg6: memref<4x1xf32, #tpu.memory_space<vmem>>, %arg7: memref<2x4x256xf32, #tpu.memory_space<vmem>>) attributes {dimension_semantics = [], scalar_prefetch = 0 : i64, scratch_operands = 0 : i64, tpu.core_type = #tpu.core_type<tc>} {
    %c0 = arith.constant 0 : index
    %c0_0 = arith.constant 0 : index
    %c0_1 = arith.constant 0 : index
    %0 = vector.load %arg1[%c0, %c0_0, %c0_1] : memref<2x4x256xf32, #tpu.memory_space<vmem>>, vector<2x4x256xf32>
    %cst = arith.constant 1.000000e-01 : f32
    %1 = vector.broadcast %cst : f32 to vector<2x4x256xf32>
    %2 = arith.mulf %0, %1 : vector<2x4x256xf32>
    %c0_2 = arith.constant 0 : index
    %c0_3 = arith.constant 0 : index
    %c0_4 = arith.constant 0 : index
    %3 = vector.load %arg0[%c0_2, %c0_3, %c0_4] : memref<2x4x256xf32, #tpu.memory_space<vmem>>, vector<1x4x256xf32>
    %4 = vector.shape_cast %3 : vector<1x4x256xf32> to vector<4x256xf32>
    %5 = vector.extract_strided_slice %2 {offsets = [0, 0, 0], sizes = [1, 4, 256], strides = [1, 1, 1]} : vector<2x4x256xf32> to vector<1x4x256xf32>
    %6 = vector.shape_cast %5 : vector<1x4x256xf32> to vector<4x256xf32>
    %7 = tpu.concatenate %4, %6 in 0 : vector<4x256xf32>, vector<4x256xf32> -> vector<8x256xf32>
    %c1 = arith.constant 1 : index
    %c0_5 = arith.constant 0 : index
    %c0_6 = arith.constant 0 : index
    %8 = vector.load %arg0[%c1, %c0_5, %c0_6] : memref<2x4x256xf32, #tpu.memory_space<vmem>>, vector<1x4x256xf32>
    %9 = vector.shape_cast %8 : vector<1x4x256xf32> to vector<4x256xf32>
    %10 = vector.extract_strided_slice %2 {offsets = [1, 0, 0], sizes = [1, 4, 256], strides = [1, 1, 1]} : vector<2x4x256xf32> to vector<1x4x256xf32>
    %11 = vector.shape_cast %10 : vector<1x4x256xf32> to vector<4x256xf32>
    %12 = tpu.concatenate %9, %11 in 0 : vector<4x256xf32>, vector<4x256xf32> -> vector<8x256xf32>
    %13 = tpu.concatenate %7, %12 in 1 : vector<8x256xf32>, vector<8x256xf32> -> vector<8x512xf32>
    %c0_7 = arith.constant 0 : index
    %c0_8 = arith.constant 0 : index
    %14 = vector.load %arg2[%c0_7, %c0_8] : memref<9x512xf32, #tpu.memory_space<vmem>>, vector<9x512xf32>
    %c17_i32 = arith.constant 17 : i32
    %15 = tpu.dynamic_rotate %13 by %c17_i32 dim 1 : vector<8x512xf32>, i32 -> vector<8x512xf32>
    %16 = vector.extract_strided_slice %14 {offsets = [0, 0], sizes = [1, 512], strides = [1, 1]} : vector<9x512xf32> to vector<1x512xf32>
    %17 = vector.broadcast %16 : vector<1x512xf32> to vector<8x512xf32>
    %18 = arith.mulf %15, %17 : vector<8x512xf32>
    %c16_i32 = arith.constant 16 : i32
    %19 = tpu.dynamic_rotate %13 by %c16_i32 dim 1 : vector<8x512xf32>, i32 -> vector<8x512xf32>
    %20 = vector.extract_strided_slice %14 {offsets = [1, 0], sizes = [1, 512], strides = [1, 1]} : vector<9x512xf32> to vector<1x512xf32>
    %21 = vector.broadcast %20 : vector<1x512xf32> to vector<8x512xf32>
    %22 = arith.mulf %19, %21 : vector<8x512xf32>
    %c15_i32 = arith.constant 15 : i32
    %23 = tpu.dynamic_rotate %13 by %c15_i32 dim 1 : vector<8x512xf32>, i32 -> vector<8x512xf32>
    %24 = vector.extract_strided_slice %14 {offsets = [2, 0], sizes = [1, 512], strides = [1, 1]} : vector<9x512xf32> to vector<1x512xf32>
    %25 = vector.broadcast %24 : vector<1x512xf32> to vector<8x512xf32>
    %26 = arith.mulf %23, %25 : vector<8x512xf32>
    %c1_i32 = arith.constant 1 : i32
    %27 = tpu.dynamic_rotate %13 by %c1_i32 dim 1 : vector<8x512xf32>, i32 -> vector<8x512xf32>
    %28 = vector.extract_strided_slice %14 {offsets = [3, 0], sizes = [1, 512], strides = [1, 1]} : vector<9x512xf32> to vector<1x512xf32>
    %29 = vector.broadcast %28 : vector<1x512xf32> to vector<8x512xf32>
    %30 = arith.mulf %27, %29 : vector<8x512xf32>
    %c511_i32 = arith.constant 511 : i32
    %31 = tpu.dynamic_rotate %13 by %c511_i32 dim 1 : vector<8x512xf32>, i32 -> vector<8x512xf32>
    %32 = vector.extract_strided_slice %14 {offsets = [5, 0], sizes = [1, 512], strides = [1, 1]} : vector<9x512xf32> to vector<1x512xf32>
    %33 = vector.broadcast %32 : vector<1x512xf32> to vector<8x512xf32>
    %34 = arith.mulf %31, %33 : vector<8x512xf32>
    %c497_i32 = arith.constant 497 : i32
    %35 = tpu.dynamic_rotate %13 by %c497_i32 dim 1 : vector<8x512xf32>, i32 -> vector<8x512xf32>
    %36 = vector.extract_strided_slice %14 {offsets = [6, 0], sizes = [1, 512], strides = [1, 1]} : vector<9x512xf32> to vector<1x512xf32>
    %37 = vector.broadcast %36 : vector<1x512xf32> to vector<8x512xf32>
    %38 = arith.mulf %35, %37 : vector<8x512xf32>
    %c496_i32 = arith.constant 496 : i32
    %39 = tpu.dynamic_rotate %13 by %c496_i32 dim 1 : vector<8x512xf32>, i32 -> vector<8x512xf32>
    %40 = vector.extract_strided_slice %14 {offsets = [7, 0], sizes = [1, 512], strides = [1, 1]} : vector<9x512xf32> to vector<1x512xf32>
    %41 = vector.broadcast %40 : vector<1x512xf32> to vector<8x512xf32>
    %42 = arith.mulf %39, %41 : vector<8x512xf32>
    %c495_i32 = arith.constant 495 : i32
    %43 = tpu.dynamic_rotate %13 by %c495_i32 dim 1 : vector<8x512xf32>, i32 -> vector<8x512xf32>
    %44 = vector.extract_strided_slice %14 {offsets = [8, 0], sizes = [1, 512], strides = [1, 1]} : vector<9x512xf32> to vector<1x512xf32>
    %45 = vector.broadcast %44 : vector<1x512xf32> to vector<8x512xf32>
    %46 = arith.mulf %43, %45 : vector<8x512xf32>
    %47 = tpu.concatenate %18, %22, %26, %30, %13, %34, %38, %42, %46 in 0 : vector<8x512xf32>, vector<8x512xf32>, vector<8x512xf32>, vector<8x512xf32>, vector<8x512xf32>, vector<8x512xf32>, vector<8x512xf32>, vector<8x512xf32>, vector<8x512xf32> -> vector<72x512xf32>
    %c0_9 = arith.constant 0 : index
    %c0_10 = arith.constant 0 : index
    %48 = vector.load %arg3[%c0_9, %c0_10] : memref<32x72xf32, #tpu.memory_space<vmem>>, vector<32x72xf32>
    %cst_11 = arith.constant dense<0.000000e+00> : vector<32x512xf32>
    %49 = tpu.matmul %48, %47, %cst_11 {dimension_numbers = #tpu.dot_dimension_numbers<[1], [0], [0], [1], [0, 0, 1, 1], [], []>} : vector<32x72xf32>, vector<72x512xf32>, vector<32x512xf32> -> vector<32x512xf32>
    %c0_12 = arith.constant 0 : index
    %c0_13 = arith.constant 0 : index
    %50 = vector.load %arg4[%c0_12, %c0_13] : memref<32x1xf32, #tpu.memory_space<vmem>>, vector<32x1xf32>
    %51 = vector.broadcast %50 : vector<32x1xf32> to vector<32x512xf32>
    %52 = arith.addf %49, %51 : vector<32x512xf32>
    %cst_14 = arith.constant 0.000000e+00 : f32
    %53 = vector.broadcast %cst_14 : f32 to vector<32x512xf32>
    %54 = arith.maximumf %52, %53 : vector<32x512xf32>
    %c17_i32_15 = arith.constant 17 : i32
    %55 = tpu.dynamic_rotate %54 by %c17_i32_15 dim 1 : vector<32x512xf32>, i32 -> vector<32x512xf32>
    %56 = vector.extract_strided_slice %14 {offsets = [0, 0], sizes = [1, 512], strides = [1, 1]} : vector<9x512xf32> to vector<1x512xf32>
    %57 = vector.broadcast %56 : vector<1x512xf32> to vector<32x512xf32>
    %58 = arith.mulf %55, %57 : vector<32x512xf32>
    %c16_i32_16 = arith.constant 16 : i32
    %59 = tpu.dynamic_rotate %54 by %c16_i32_16 dim 1 : vector<32x512xf32>, i32 -> vector<32x512xf32>
    %60 = vector.extract_strided_slice %14 {offsets = [1, 0], sizes = [1, 512], strides = [1, 1]} : vector<9x512xf32> to vector<1x512xf32>
    %61 = vector.broadcast %60 : vector<1x512xf32> to vector<32x512xf32>
    %62 = arith.mulf %59, %61 : vector<32x512xf32>
    %c15_i32_17 = arith.constant 15 : i32
    %63 = tpu.dynamic_rotate %54 by %c15_i32_17 dim 1 : vector<32x512xf32>, i32 -> vector<32x512xf32>
    %64 = vector.extract_strided_slice %14 {offsets = [2, 0], sizes = [1, 512], strides = [1, 1]} : vector<9x512xf32> to vector<1x512xf32>
    %65 = vector.broadcast %64 : vector<1x512xf32> to vector<32x512xf32>
    %66 = arith.mulf %63, %65 : vector<32x512xf32>
    %c1_i32_18 = arith.constant 1 : i32
    %67 = tpu.dynamic_rotate %54 by %c1_i32_18 dim 1 : vector<32x512xf32>, i32 -> vector<32x512xf32>
    %68 = vector.extract_strided_slice %14 {offsets = [3, 0], sizes = [1, 512], strides = [1, 1]} : vector<9x512xf32> to vector<1x512xf32>
    %69 = vector.broadcast %68 : vector<1x512xf32> to vector<32x512xf32>
    %70 = arith.mulf %67, %69 : vector<32x512xf32>
    %c511_i32_19 = arith.constant 511 : i32
    %71 = tpu.dynamic_rotate %54 by %c511_i32_19 dim 1 : vector<32x512xf32>, i32 -> vector<32x512xf32>
    %72 = vector.extract_strided_slice %14 {offsets = [5, 0], sizes = [1, 512], strides = [1, 1]} : vector<9x512xf32> to vector<1x512xf32>
    %73 = vector.broadcast %72 : vector<1x512xf32> to vector<32x512xf32>
    %74 = arith.mulf %71, %73 : vector<32x512xf32>
    %c497_i32_20 = arith.constant 497 : i32
    %75 = tpu.dynamic_rotate %54 by %c497_i32_20 dim 1 : vector<32x512xf32>, i32 -> vector<32x512xf32>
    %76 = vector.extract_strided_slice %14 {offsets = [6, 0], sizes = [1, 512], strides = [1, 1]} : vector<9x512xf32> to vector<1x512xf32>
    %77 = vector.broadcast %76 : vector<1x512xf32> to vector<32x512xf32>
    %78 = arith.mulf %75, %77 : vector<32x512xf32>
    %c496_i32_21 = arith.constant 496 : i32
    %79 = tpu.dynamic_rotate %54 by %c496_i32_21 dim 1 : vector<32x512xf32>, i32 -> vector<32x512xf32>
    %80 = vector.extract_strided_slice %14 {offsets = [7, 0], sizes = [1, 512], strides = [1, 1]} : vector<9x512xf32> to vector<1x512xf32>
    %81 = vector.broadcast %80 : vector<1x512xf32> to vector<32x512xf32>
    %82 = arith.mulf %79, %81 : vector<32x512xf32>
    %c495_i32_22 = arith.constant 495 : i32
    %83 = tpu.dynamic_rotate %54 by %c495_i32_22 dim 1 : vector<32x512xf32>, i32 -> vector<32x512xf32>
    %84 = vector.extract_strided_slice %14 {offsets = [8, 0], sizes = [1, 512], strides = [1, 1]} : vector<9x512xf32> to vector<1x512xf32>
    %85 = vector.broadcast %84 : vector<1x512xf32> to vector<32x512xf32>
    %86 = arith.mulf %83, %85 : vector<32x512xf32>
    %87 = tpu.concatenate %58, %62, %66, %70, %54, %74, %78, %82, %86 in 0 : vector<32x512xf32>, vector<32x512xf32>, vector<32x512xf32>, vector<32x512xf32>, vector<32x512xf32>, vector<32x512xf32>, vector<32x512xf32>, vector<32x512xf32>, vector<32x512xf32> -> vector<288x512xf32>
    %c0_23 = arith.constant 0 : index
    %c0_24 = arith.constant 0 : index
    %88 = vector.load %arg5[%c0_23, %c0_24] : memref<4x288xf32, #tpu.memory_space<vmem>>, vector<4x288xf32>
    %cst_25 = arith.constant dense<0.000000e+00> : vector<4x512xf32>
    %89 = tpu.matmul %88, %87, %cst_25 {dimension_numbers = #tpu.dot_dimension_numbers<[1], [0], [0], [1], [0, 0, 1, 1], [], []>} : vector<4x288xf32>, vector<288x512xf32>, vector<4x512xf32> -> vector<4x512xf32>
    %c0_26 = arith.constant 0 : index
    %c0_27 = arith.constant 0 : index
    %90 = vector.load %arg6[%c0_26, %c0_27] : memref<4x1xf32, #tpu.memory_space<vmem>>, vector<4x1xf32>
    %91 = vector.broadcast %90 : vector<4x1xf32> to vector<4x512xf32>
    %92 = arith.addf %89, %91 : vector<4x512xf32>
    %93 = vector.extract_strided_slice %92 {offsets = [0, 0], sizes = [4, 256], strides = [1, 1]} : vector<4x512xf32> to vector<4x256xf32>
    %c0_28 = arith.constant 0 : index
    %c0_29 = arith.constant 0 : index
    %c0_30 = arith.constant 0 : index
    %94 = vector.load %arg7[%c0_28, %c0_29, %c0_30] : memref<2x4x256xf32, #tpu.memory_space<vmem>>, vector<1x4x256xf32>
    %95 = vector.shape_cast %94 : vector<1x4x256xf32> to vector<4x256xf32>
    %96 = vector.shape_cast %93 : vector<4x256xf32> to vector<1x4x256xf32>
    tpu.vector_store %arg7[%c0_28, %c0_29, %c0_30], %96 {strides = array<i32>} : memref<2x4x256xf32, #tpu.memory_space<vmem>>, vector<1x4x256xf32>,
    %97 = vector.extract_strided_slice %92 {offsets = [0, 256], sizes = [4, 256], strides = [1, 1]} : vector<4x512xf32> to vector<4x256xf32>
    %c1_31 = arith.constant 1 : index
    %c0_32 = arith.constant 0 : index
    %c0_33 = arith.constant 0 : index
    %98 = vector.load %arg7[%c1_31, %c0_32, %c0_33] : memref<2x4x256xf32, #tpu.memory_space<vmem>>, vector<1x4x256xf32>
    %99 = vector.shape_cast %98 : vector<1x4x256xf32> to vector<4x256xf32>
    %100 = vector.shape_cast %97 : vector<4x256xf32> to vector<1x4x256xf32>
    tpu.vector_store %arg7[%c1_31, %c0_32, %c0_33], %100 {strides = array<i32>} : memref<2x4x256xf32, #tpu.memory_space<vmem>>, vector<1x4x256xf32>,
    return
  }
}

</mosaic_0001>

<bundles_post_ra>
// kernel: g_wrapper_forward.1
= control target key start
LH: loop header
LB: loop body
LE: loop exit
PB: predicated region body
PF: predicated region fallthrough
CT: control target
= control target key end

     0   :  { %vm37_vm0 = vcmask 1043456   ;;  %s1604_s9 = smov 17   ;;  %s1607_s10 = smov 1   ;;  %v3278_v14 = vmov 0.0   ;;  %v1613_v15 = vmov 0   ;;  %v66_v20 = vlaneseq  ;;  %s3270_s0 = inlined_call_operand.vmem [shape: f32[2,4,256], index: 0, kind: input, shape index: {}]   ;;  %s3271_s1 = inlined_call_operand.vmem [shape: f32[2,4,256], index: 1, kind: input, shape index: {}]   ;;  %s3272_s4 = inlined_call_operand.vmem [shape: f32[32,1], index: 4, kind: input, shape index: {}]   ;;  %s3273_s2 = inlined_call_operand.vmem [shape: f32[9,512], index: 2, kind: input, shape index: {}]   ;;  %s3274_s3 = inlined_call_operand.vmem [shape: f32[32,72], index: 3, kind: input, shape index: {}]   ;;  %s3275_s5 = inlined_call_operand.vmem [shape: f32[4,288], index: 5, kind: input, shape index: {}]   ;;  %s3276_s6 = inlined_call_operand.vmem [shape: f32[4,1], index: 6, kind: input, shape index: {}]   ;;  %s3277_s7 = inlined_call_operand.vmem [shape: f32[2,4,256], index: 7, kind: output, shape index: {}]  }
   0x1   :  { %v27_v0 = vld [vmem:[%s3271_s1 + $0x8] sm:$0xff]  ;;  %v26_v2 = vld [vmem:[%s3271_s1] sm:$0xff]  ;;  %s1606_s1 = smov 15   ;;  %s1608_s11 = smov 127   ;;  %429 = vmatprep.mubr.f32.mxu0 %v3278_v14  ;;  %518 = vmatprep.mubr.f32.mxu1 %v3278_v14  ;;  %v330_v18 = vld [vmem:[%s3272_s4 + $0x10] sm:$0xff]  ;;  %vm352_vm9 = vcmask 588800  }
   0x2   :  { %v1385_v1 = vld [vmem:[%s3270_s0 + $0x8] sm:$0xff]  ;;  %v29_v3 = vmul.f32 0.1, %v27_v0  ;;  %v28_v5 = vmul.f32 0.1, %v26_v2  ;;  %v30_v6 = vld [vmem:[%s3270_s0] sm:$0xff]  ;;  %1596 = vset.pattern.permute.xlu1 %v1613_v15  ;;  %1595 = vset.pattern.permute.xlu0 %v1613_v15 }
   0x3   :  { %v43_v4 = vcombine.high %v1385_v1, %v1385_v1  ;;  %v32_v7 = vcombine.high %v30_v6, %v30_v6  ;;  %s1605_s0 = smov 16   ;;  %s1609_s12 = smov 113   ;;  %v329_v16 = vld [vmem:[%s3272_s4 + $0x8] sm:$0xff]  ;;  %v328_v17 = vld [vmem:[%s3272_s4] sm:$0xff]  ;;  %v331_v19 = vld [vmem:[%s3272_s4 + $0x18] sm:$0xff]  ;;  %v1756_v21 = vshrl.u32 %v66_v20, 7 }
   0x4   :  { %v46_v9 = vcombine.low %v29_v3, %v29_v3  ;;  %v35_v10 = vcombine.low %v28_v5, %v28_v5  ;;  %s1610_s13 = smov 112   ;;  %s1612_s14 = smov 111   ;;  %v1758_v24 = vand.u32 127, %v66_v20  ;;  %v1765_v28 = vld [vmem:[%s3273_s2 + $0x8] sm:$0xff]  ;;  %v1771_v30 = vld [vmem:[%s3273_s2] sm:$0xff]  ;;  %v1783_v33 = vld [vmem:[%s3273_s2 + $0x18] sm:$0xff] }
   0x5   :  { %v1667_v8 = vsel %vm37_vm0, %v43_v4, %v29_v3  ;;  %v1672_v11 = vsel %vm37_vm0, %v32_v7, %v28_v5  ;;  %v75_v25 = vsub.s32 0, %v1756_v21  ;;  %v108_v26 = vsub.s32 1, %v1756_v21  ;;  %v1788_v34 = vld [vmem:[%s3273_s2 + $0x10] sm:$0xff] }
   0x6   :  { %64 = vrot.lane.b32.xlu1 %v1667_v8, %s1604_s9  ;;  %60 = vrot.lane.b32.xlu0 %v1672_v11, %s1604_s9  ;;  %v1677_v12 = vsel %vm37_vm0, %v1385_v1, %v46_v9  ;;  %v1680_v13 = vsel %vm37_vm0, %v30_v6, %v35_v10  ;;  %vm68_vm1 = vcmp.lt.s32.totalorder %v1758_v24, 17  ;;  %vm101_vm2 = vcmp.lt.s32.totalorder %v1758_v24, 16 }
   0x7   :  { %v1775_v31 = vrot.slane %v1765_v28, %v75_v25  ;;  %v1778_v32 = vrot.slane %v1765_v28, %v108_v26  ;;  %v1793_v38 = vrot.slane %v1771_v30, %v75_v25  ;;  %v1796_v39 = vrot.slane %v1771_v30, %v108_v26 }
   0x8   :  { %v1801_v41 = vrot.slane %v1783_v33, %v75_v25  ;;  %v1804_v42 = vrot.slane %v1783_v33, %v108_v26  ;;  %v1807_v43 = vrot.slane %v1788_v34, %v75_v25  ;;  %v1814_v47 = vrot.slane %v1788_v34, %v108_v26 }
   0x9   :  { %3405 = vst [vmem:[#allocation2_spill] sm:$0xff] %v1775_v31  ;;  %v141_v3 = vsub.s32 2, %v1756_v21  ;;  %v174_v4 = vsub.s32 3, %v1756_v21  ;;  %vm134_vm3 = vcmp.lt.s32.totalorder %v1758_v24, 15  ;;  %vm167_vm4 = vcmp.lt.s32.totalorder %v1758_v24, 1 }
   0xa   :  { %62 = vrot.lane.b32.xlu1 %v1677_v12, %s1604_s9  ;;  %58 = vrot.lane.b32.xlu0 %v1680_v13, %s1604_s9  ;;  %vm200_vm5 = vcmp.lt.s32.totalorder %v1758_v24, 127  ;;  %vm266_vm6 = vcmp.lt.s32.totalorder %v1758_v24, 112  ;;  %vm233_vm7 = vcmp.lt.s32.totalorder %v1758_v24, 113  ;;  %vm299_vm8 = vcmp.lt.s32.totalorder %v1758_v24, 111 }
   0xb   :  { %v1837_v7 = vrot.slane %v1765_v28, %v141_v3  ;;  %v1840_v9 = vrot.slane %v1765_v28, %v174_v4  ;;  %vm1083_vm10 = vcmask 261120  }
   0xe   :  { %95 = vrot.lane.b32.xlu1 %v1672_v11, %s1605_s0  ;;  %93 = vrot.lane.b32.xlu0 %v1680_v13, %s1605_s0 }
  0x12   :  { %99 = vrot.lane.b32.xlu1 %v1667_v8, %s1605_s0  ;;  %97 = vrot.lane.b32.xlu0 %v1677_v12, %s1605_s0 }
  0x16   :  { %128 = vrot.lane.b32.xlu1 %v1672_v11, %s1606_s1  ;;  %126 = vrot.lane.b32.xlu0 %v1680_v13, %s1606_s1 }
  0x1a   :  { %132 = vrot.lane.b32.xlu1 %v1667_v8, %s1606_s1  ;;  %130 = vrot.lane.b32.xlu0 %v1677_v12, %s1606_s1 }
  0x1e   :  { %161 = vrot.lane.b32.xlu1 %v1672_v11, %s1607_s10  ;;  %159 = vrot.lane.b32.xlu0 %v1680_v13, %s1607_s10 }
  0x22   :  { %165 = vrot.lane.b32.xlu1 %v1667_v8, %s1607_s10  ;;  %163 = vrot.lane.b32.xlu0 %v1677_v12, %s1607_s10 }
  0x26   :  { %194 = vrot.lane.b32.xlu1 %v1672_v11, %s1608_s11  ;;  %192 = vrot.lane.b32.xlu0 %v1680_v13, %s1608_s11 }
  0x2a   :  { %198 = vrot.lane.b32.xlu1 %v1667_v8, %s1608_s11  ;;  %196 = vrot.lane.b32.xlu0 %v1677_v12, %s1608_s11 }
  0x2e   :  { %227 = vrot.lane.b32.xlu1 %v1672_v11, %s1609_s12  ;;  %225 = vrot.lane.b32.xlu0 %v1680_v13, %s1609_s12 }
  0x32   :  { %231 = vrot.lane.b32.xlu1 %v1667_v8, %s1609_s12  ;;  %229 = vrot.lane.b32.xlu0 %v1677_v12, %s1609_s12 }
  0x36   :  { %260 = vrot.lane.b32.xlu1 %v1672_v11, %s1610_s13  ;;  %258 = vrot.lane.b32.xlu0 %v1680_v13, %s1610_s13 }
  0x3a   :  { %264 = vrot.lane.b32.xlu1 %v1667_v8, %s1610_s13  ;;  %262 = vrot.lane.b32.xlu0 %v1677_v12, %s1610_s13 }
  0x3e   :  { %293 = vrot.lane.b32.xlu1 %v1672_v11, %s1612_s14  ;;  %291 = vrot.lane.b32.xlu0 %v1680_v13, %s1612_s14 }
  0x42   :  { %297 = vrot.lane.b32.xlu1 %v1667_v8, %s1612_s14  ;;  %295 = vrot.lane.b32.xlu0 %v1677_v12, %s1612_s14 }
  0x46   :  { %339 = vperm.xlu1 %1596, %v329_v16   ;;  %334 = vperm.xlu0 %1595, %v328_v17   ;;  %v1845_v16 = vrot.slane %v1771_v30, %v141_v3  ;;  %v1848_v17 = vrot.slane %v1788_v34, %v141_v3 }
  0x4a   :  { %344 = vperm.xlu1 %1596, %v330_v18   ;;  %349 = vperm.xlu0 %1595, %v331_v19   ;;  %v1851_v19 = vrot.slane %v1783_v33, %v141_v3 }
  0x78   :  { %v65_v22 = vpop.permute.xlu1 %64  ;;  %v61_v23 = vpop.permute.xlu0 %60 }
  0x7c   :  { %v63_v27 = vpop.permute.xlu1 %62  ;;  %v59_v29 = vpop.permute.xlu0 %58 }
  0x7d   :  { %v71_v36 = vsel %vm68_vm1, %v59_v29, %v61_v23  ;;  %v72_v44 = vsel %vm68_vm1, %v65_v22, %v59_v29  ;;  %v70_v48 = vsel %vm68_vm1, %v61_v23, %v63_v27  ;;  %v69_v50 = vsel %vm68_vm1, %v63_v27, %v65_v22 }
  0x7e   :  { %v90_v45 = vmul.f32 %v1775_v31, %v71_v36  ;;  %v89_v55 = vmul.f32 %v1793_v38, %v72_v44  ;;  %v92_v58 = vmul.f32 %v1801_v41, %v69_v50  ;;  %v91_v60 = vmul.f32 %v1807_v43, %v70_v48 }
  0x7f   :  { %v1856_v22 = vrot.slane %v1771_v30, %v174_v4  ;;  %v1859_v23 = vrot.slane %v1788_v34, %v174_v4  ;;  %v1866_v29 = vrot.slane %v1783_v33, %v174_v4 }
  0x80   :  { %v96_v35 = vpop.permute.xlu1 %95  ;;  %v94_v37 = vpop.permute.xlu0 %93 }
  0x81   :  { %v104_v40 = vsel %vm101_vm2, %v94_v37, %v96_v35  ;;  %3406 = vst [vmem:[#allocation3_spill] sm:$0xff] %v1856_v22  ;;  %3407 = vst [vmem:[#allocation4_spill] sm:$0xff] %v1859_v23 }
  0x82   :  { %v123_v46 = vmul.f32 %v1778_v32, %v104_v40  ;;  %3408 = vst [vmem:[#allocation5_spill] sm:$0xff] %v1866_v29 }
  0x84   :  { %v100_v49 = vpop.permute.xlu1 %99  ;;  %v98_v52 = vpop.permute.xlu0 %97  ;;  %v1401_v53 = vpack.c.bf16 %v123_v46, %v90_v45  ;;  %v207_v46 = vsub.s32 5, %v1756_v21 }
  0x85   :  { %v105_v51 = vsel %vm101_vm2, %v100_v49, %v94_v37  ;;  %v103_v54 = vsel %vm101_vm2, %v96_v35, %v98_v52  ;;  %v102_v57 = vsel %vm101_vm2, %v98_v52, %v100_v49 }
  0x86   :  { %v122_v56 = vmul.f32 %v1796_v39, %v105_v51  ;;  %1402 = vmatprep.subr.bf16.mxu0 %v1401_v53  ;;  %v125_v59 = vmul.f32 %v1804_v42, %v102_v57  ;;  %v124_v61 = vmul.f32 %v1814_v47, %v103_v54 }
  0x88   :  { %v129_v62 = vpop.permute.xlu1 %128  ;;  %v1403_v63 = vpack.c.bf16 %v122_v56, %v89_v55  ;;  %v127_v0 = vpop.permute.xlu0 %126  ;;  %v1417_v1 = vpack.c.bf16 %v125_v59, %v92_v58  ;;  %v1419_v2 = vpack.c.bf16 %v124_v61, %v91_v60  ;;  %v1887_v61 = vrot.slane %v1771_v30, %v207_v46 }
  0x89   :  { %v137_v10 = vsel %vm134_vm3, %v127_v0, %v129_v62 }
  0x8a   :  { %1404 = vmatpush1.bf16.msra.mxu0 %v1403_v63  ;;  %1418 = vmatprep.subr.bf16.mxu1 %v1417_v1  ;;  %v156_v25 = vmul.f32 %v1837_v7, %v137_v10  ;;  %3409 = vst [vmem:[#allocation6_spill] sm:$0xff] %v1887_v61  ;;  %v1898_v1 = vrot.slane %v1788_v34, %v207_v46 }
  0x8b   :  { %1420 = vmatpush1.bf16.msra.mxu1 %v1419_v2 }
  0x8c   :  { %v133_v5 = vpop.permute.xlu1 %132  ;;  %v131_v6 = vpop.permute.xlu0 %130  ;;  %3412 = vst [vmem:[#allocation9_spill] sm:$0xff] %v1898_v1 }
  0x8d   :  { %v138_v26 = vsel %vm134_vm3, %v133_v5, %v127_v0  ;;  %v135_v35 = vsel %vm134_vm3, %v131_v6, %v133_v5  ;;  %v136_v36 = vsel %vm134_vm3, %v129_v62, %v131_v6  ;;  %v1890_v62 = vrot.slane %v1783_v33, %v207_v46 }
  0x8e   :  { %v155_v48 = vmul.f32 %v1845_v16, %v138_v26  ;;  %v157_v52 = vmul.f32 %v1848_v17, %v136_v36  ;;  %v158_v53 = vmul.f32 %v1851_v19, %v135_v35  ;;  %v1895_v0 = vrot.slane %v1765_v28, %v207_v46 }
  0x8f   :  { %3410 = vst [vmem:[#allocation7_spill] sm:$0xff] %v1890_v62  ;;  %v240_v46 = vsub.s32 6, %v1756_v21 }
  0x90   :  { %v162_v15 = vpop.permute.xlu1 %161  ;;  %v160_v18 = vpop.permute.xlu0 %159  ;;  %3411 = vst [vmem:[#allocation8_spill] sm:$0xff] %v1895_v0 }
  0x91   :  { %v170_v20 = vsel %vm167_vm4, %v160_v18, %v162_v15 }
  0x92   :  { %v189_v27 = vmul.f32 %v1840_v9, %v170_v20 }
  0x94   :  { %v166_v37 = vpop.permute.xlu1 %165  ;;  %v164_v44 = vpop.permute.xlu0 %163  ;;  %v1405_v45 = vpack.c.bf16 %v189_v27, %v156_v25 }
  0x95   :  { %v171_v40 = vsel %vm167_vm4, %v166_v37, %v160_v18  ;;  %v168_v50 = vsel %vm167_vm4, %v164_v44, %v166_v37  ;;  %v169_v51 = vsel %vm167_vm4, %v162_v15, %v164_v44 }
  0x96   :  { %v188_v49 = vmul.f32 %v1856_v22, %v171_v40  ;;  %v190_v54 = vmul.f32 %v1859_v23, %v169_v51  ;;  %v191_v55 = vmul.f32 %v1866_v29, %v168_v50  ;;  %1406 = vmatprep.subr.bf16.mxu0 %v1405_v45  ;;  %v273_v45 = vsub.s32 7, %v1756_v21 }
  0x97   :  { %v1933_v50 = vrot.slane %v1788_v34, %v240_v46 }
  0x98   :  { %v195_v56 = vpop.permute.xlu1 %194  ;;  %v1407_v57 = vpack.c.bf16 %v188_v49, %v155_v48  ;;  %v193_v58 = vpop.permute.xlu0 %192  ;;  %v1421_v59 = vpack.c.bf16 %v191_v55, %v158_v53  ;;  %v1423_v60 = vpack.c.bf16 %v190_v54, %v157_v52  ;;  %v1924_v48 = vrot.slane %v1765_v28, %v240_v46 }
  0x99   :  { %v203_v63 = vsel %vm200_vm5, %v193_v58, %v195_v56  ;;  %v1927_v49 = vrot.slane %v1771_v30, %v273_v45  ;;  %v1930_v21 = vrot.slane %v1783_v33, %v273_v45  ;;  %3417 = vst [vmem:[#allocation14_spill] sm:$0xff] %v1933_v50  ;;  %v1938_v52 = vrot.slane %v1765_v28, %v273_v45 }
  0x9a   :  { %1408 = vmatpush1.bf16.msra.mxu0 %v1407_v57  ;;  %1422 = vmatprep.subr.bf16.mxu1 %v1421_v59  ;;  %v221_v5 = vmul.f32 %v1887_v61, %v203_v63  ;;  %3414 = vst [vmem:[#allocation11_spill] sm:$0xff] %v1924_v48  ;;  %v1941_v53 = vrot.slane %v1788_v34, %v273_v45 }
  0x9b   :  { %1424 = vmatpush1.bf16.msra.mxu1 %v1423_v60  ;;  %3415 = vst [vmem:[#allocation12_spill] sm:$0xff] %v1927_v49  ;;  %3416 = vst [vmem:[#allocation13_spill] sm:$0xff] %v1930_v21  ;;  %v1944_v54 = vrot.slane %v1771_v30, %v240_v46 }
  0x9c   :  { %v199_v2 = vpop.permute.xlu1 %198  ;;  %v197_v4 = vpop.permute.xlu0 %196  ;;  %v1411_v37 = vpack.c.bf16 %v221_v5, %v1680_v13  ;;  %3418 = vst [vmem:[#allocation15_spill] sm:$0xff] %v1938_v52  ;;  %3419 = vst [vmem:[#allocation16_spill] sm:$0xff] %v1941_v53 }
  0x9d   :  { %v204_v3 = vsel %vm200_vm5, %v199_v2, %v193_v58  ;;  %v201_v10 = vsel %vm200_vm5, %v197_v4, %v199_v2  ;;  %v202_v15 = vsel %vm200_vm5, %v195_v56, %v197_v4  ;;  %3420 = vst [vmem:[#allocation17_spill] sm:$0xff] %v1944_v54 }
  0x9e   :  { %v224_v6 = vmul.f32 %v1890_v62, %v204_v3  ;;  %v222_v18 = vmul.f32 %v1895_v0, %v202_v15  ;;  %v223_v20 = vmul.f32 %v1898_v1, %v201_v10 }
  0xa0   :  { %v228_v25 = vpop.permute.xlu1 %227  ;;  %v1425_v26 = vpack.c.bf16 %v224_v6, %v1667_v8  ;;  %v226_v27 = vpop.permute.xlu0 %225  ;;  %v1409_v35 = vpack.c.bf16 %v222_v18, %v1672_v11  ;;  %v1427_v36 = vpack.c.bf16 %v223_v20, %v1677_v12  ;;  %v1919_v11 = vrot.slane %v1783_v33, %v240_v46  ;;  %v1989_v46 = vld [vmem:[%s3273_s2 + $0x20] ss:$0 sm:$0xff] }
  0xa1   :  { %v236_v57 = vsel %vm233_vm7, %v226_v27, %v228_v25  ;;  %3424 = vst [vmem:[#allocation21_spill] sm:$0xff] %v1989_v46 }
  0xa2   :  { %1426 = vmatprep.subr.bf16.mxu1 %v1425_v26  ;;  %1410 = vmatprep.subr.bf16.mxu0 %v1409_v35  ;;  %3413 = vst [vmem:[#allocation10_spill] sm:$0xff] %v1919_v11  ;;  %v254_v6 = vmul.f32 %v1944_v54, %v236_v57  ;;  %v325_v57 = vld [vmem:[%s3274_s3 + $0x8] sm:$0xff] }
  0xa3   :  { %1428 = vmatpush1.bf16.msra.mxu1 %v1427_v36  ;;  %1412 = vmatpush1.bf16.msra.mxu0 %v1411_v37  ;;  %v1975_v36 = vld [vmem:[%s3273_s2 + $0x28] ss:$0 sm:$0xff]  ;;  %v1980_v37 = vld [vmem:[%s3273_s2 + $0x30] ss:$0 sm:$0xff] }
  0xa4   :  { %v232_v40 = vpop.permute.xlu1 %231  ;;  %v230_v44 = vpop.permute.xlu0 %229  ;;  %3422 = vst [vmem:[#allocation19_spill] sm:$0xff] %v1975_v36  ;;  %3423 = vst [vmem:[#allocation20_spill] sm:$0xff] %v1980_v37 }
  0xa5   :  { %v237_v13 = vsel %vm233_vm7, %v232_v40, %v226_v27  ;;  %v234_v55 = vsel %vm233_vm7, %v230_v44, %v232_v40  ;;  %v235_v33 = vsel %vm233_vm7, %v228_v25, %v230_v44  ;;  %v1970_v27 = vld [vmem:[%s3273_s2 + $0x38] ss:$0 sm:$0xff] }
  0xa6   :  { %v257_v58 = vmul.f32 %v1919_v11, %v237_v13  ;;  %v255_v2 = vmul.f32 %v1924_v48, %v235_v33  ;;  %v256_v3 = vmul.f32 %v1933_v50, %v234_v55  ;;  %3421 = vst [vmem:[#allocation18_spill] sm:$0xff] %v1970_v27  ;;  %v324_v33 = vld [vmem:[%s3274_s3] sm:$0xff] }
  0xa8   :  { %v261_v8 = vpop.permute.xlu1 %260  ;;  %v259_v12 = vpop.permute.xlu0 %258 }
  0xa9   :  { %v269_v51 = vsel %vm266_vm6, %v259_v12, %v261_v8 }
  0xaa   :  { %v287_v59 = vmul.f32 %v1927_v49, %v269_v51 }
  0xac   :  { %v265_v56 = vpop.permute.xlu1 %264  ;;  %v263_v34 = vpop.permute.xlu0 %262  ;;  %v1415_v26 = vpack.c.bf16 %v287_v59, %v254_v6 }
  0xad   :  { %v270_v28 = vsel %vm266_vm6, %v265_v56, %v259_v12  ;;  %v267_v60 = vsel %vm266_vm6, %v263_v34, %v265_v56  ;;  %v268_v63 = vsel %vm266_vm6, %v261_v8, %v263_v34 }
  0xae   :  { %v290_v30 = vmul.f32 %v1930_v21, %v270_v28  ;;  %v288_v4 = vmul.f32 %v1938_v52, %v268_v63  ;;  %v289_v5 = vmul.f32 %v1941_v53, %v267_v60  ;;  %v327_v28 = vld [vmem:[%s3274_s3 + $0x18] sm:$0xff] }
  0xb0   :  { %v294_v10 = vpop.permute.xlu1 %293  ;;  %v1429_v15 = vpack.c.bf16 %v290_v30, %v257_v58  ;;  %v292_v18 = vpop.permute.xlu0 %291  ;;  %v1413_v20 = vpack.c.bf16 %v288_v4, %v255_v2  ;;  %v1431_v25 = vpack.c.bf16 %v289_v5, %v256_v3  ;;  %v326_v58 = vld [vmem:[%s3274_s3 + $0x10] sm:$0xff] }
  0xb1   :  { %v302_v40 = vsel %vm299_vm8, %v292_v18, %v294_v10 }
  0xb2   :  { %1430 = vmatprep.subr.bf16.mxu1 %v1429_v15  ;;  %1414 = vmatprep.subr.bf16.mxu0 %v1413_v20  ;;  %v320_v56 = vmul.f32 %v1989_v46, %v302_v40 }
  0xb3   :  { %1432 = vmatpush1.bf16.msra.mxu1 %v1431_v25  ;;  %1416 = vmatpush1.bf16.msra.mxu0 %v1415_v26 }
  0xb4   :  { %v298_v35 = vpop.permute.xlu1 %297  ;;  %v296_v45 = vpop.permute.xlu0 %295 }
  0xb5   :  { %v303_v44 = vsel %vm299_vm8, %v298_v35, %v292_v18  ;;  %v300_v8 = vsel %vm299_vm8, %v296_v45, %v298_v35  ;;  %v301_v12 = vsel %vm299_vm8, %v294_v10, %v296_v45 }
  0xb6   :  { %v323_v13 = vmul.f32 %v1970_v27, %v303_v44  ;;  %v321_v51 = vmul.f32 %v1975_v36, %v301_v12  ;;  %v322_v55 = vmul.f32 %v1980_v37, %v300_v8 }
  0xb8   :  { %470 = vmatprep.subr.mxu1 %v323_v13  ;;  %381 = vmatprep.subr.mxu0 %v321_v51 }
  0xb9   :  { %471 = vmatpush1.msra.mxu1 %v322_v55  ;;  %382 = vmatpush1.msra.mxu0 %v320_v56 }
  0xba   :  { %1394 = vmatmul.mubr.msk.f32.vlgmr.msra.gmra.mrb[0].mxu1 %vm352_vm9, %v324_v33  ;;  %1390 = vmatmul.mubr.msk.f32.vlgmr.msra.gmra.mrb[0].mxu0 %vm352_vm9, %v324_v33 }
  0xbb   :  { %524 = vmatprep.mubr.f32.mxu1 %v3278_v14  ;;  %435 = vmatprep.mubr.f32.mxu0 %v3278_v14 }
  0xbe   :  { %1395 = vmatmul.mubr.msk.f32.gmra.mrb[2].mxu1 %vm352_vm9, %v325_v57  ;;  %1391 = vmatmul.mubr.msk.f32.gmra.mrb[2].mxu0 %vm352_vm9, %v325_v57 }
  0xbf   :  { %530 = vmatprep.mubr.f32.mxu1 %v3278_v14  ;;  %441 = vmatprep.mubr.f32.mxu0 %v3278_v14 }
  0xc2   :  { %1396 = vmatmul.mubr.msk.f32.gmra.mrb[4].mxu1 %vm352_vm9, %v326_v58  ;;  %1392 = vmatmul.mubr.msk.f32.gmra.mrb[4].mxu0 %vm352_vm9, %v326_v58 }
  0xc3   :  { %536 = vmatprep.mubr.f32.mxu1 %v3278_v14  ;;  %447 = vmatprep.mubr.f32.mxu0 %v3278_v14 }
  0xc5   :  { %v335_v34 = vpop.permute.xlu0 %334  ;;  %v340_v4 = vpop.permute.xlu1 %339 }
  0xc6   :  { %1397 = vmatmul.mubr.msk.f32.gmra.mrb[6].mxu1 %vm352_vm9, %v327_v28  ;;  %1393 = vmatmul.mubr.msk.f32.gmra.mrb[6].mxu0 %vm352_vm9, %v327_v28 }
 0x18d   :  { %v520_v59 = vpop.f32.mrb[0].mxu1  ;;  %v431_v30 = vpop.f32.mrb[0].mxu0 }
 0x18e   :  { %v521_v60 = vadd.f32 %v520_v59, %v335_v34  ;;  %v522_v63 = vpop.f32.mrb[1].mxu1  ;;  %v432_v2 = vadd.f32 %v431_v30, %v335_v34  ;;  %v433_v3 = vpop.f32.mrb[1].mxu0 }
 0x18f   :  { %v434_v58 = vadd.f32 %v433_v3, %v335_v34  ;;  %v523_v59 = vadd.f32 %v522_v63, %v335_v34  ;;  %v2171_v34 = vpop.permute.xlu1 %344  ;;  %v2177_v63 = vpop.permute.xlu0 %349 }
 0x190   :  { %v2025_v5 = vmax.f32 %v432_v2, 0.0  ;;  %v2027_v10 = vmax.f32 %v521_v60, 0.0 }
 0x191   :  { %v526_v6 = vpop.f32.mrb[2].mxu1  ;;  %v437_v15 = vpop.f32.mrb[2].mxu0  ;;  %v2115_v28 = vmax.f32 %v434_v58, 0.0  ;;  %v2121_v60 = vmax.f32 %v523_v59, 0.0 }
 0x192   :  { %3425 = vst [vmem:[#allocation22_spill] sm:$0xff] %v2025_v5  ;;  %3426 = vst [vmem:[#allocation23_spill] sm:$0xff] %v2027_v10  ;;  %v527_v18 = vadd.f32 %v526_v6, %v340_v4  ;;  %v528_v20 = vpop.f32.mrb[3].mxu1  ;;  %v438_v25 = vadd.f32 %v437_v15, %v340_v4  ;;  %v439_v26 = vpop.f32.mrb[3].mxu0  ;;  %559 = vrot.lane.b32.xlu1 %v2025_v5, %s1604_s9 }
 0x193   :  { %3429 = vst [vmem:[#allocation26_spill] sm:$0xff] %v2115_v28  ;;  %v440_v30 = vadd.f32 %v439_v26, %v340_v4  ;;  %3430 = vst [vmem:[#allocation27_spill] sm:$0xff] %v2121_v60  ;;  %v529_v3 = vadd.f32 %v528_v20, %v340_v4 }
 0x194   :  { %v2031_v35 = vmax.f32 %v527_v18, 0.0  ;;  %v2033_v40 = vmax.f32 %v438_v25, 0.0 }
 0x195   :  { %v2035_v44 = vpop.f32.mrb[4].mxu1  ;;  %v2037_v45 = vpop.f32.mrb[4].mxu0  ;;  %v2123_v2 = vmax.f32 %v440_v30, 0.0  ;;  %v2129_v6 = vmax.f32 %v529_v3, 0.0 }
 0x196   :  { %3427 = vst [vmem:[#allocation24_spill] sm:$0xff] %v2031_v35  ;;  %3428 = vst [vmem:[#allocation25_spill] sm:$0xff] %v2033_v40  ;;  %v2039_v8 = vpop.f32.mrb[5].mxu1  ;;  %v2043_v13 = vpop.f32.mrb[5].mxu0  ;;  %561 = vrot.lane.b32.xlu0 %v2033_v40, %s1604_s9  ;;  %575 = vrot.lane.b32.xlu1 %v2027_v10, %s1604_s9  ;;  %v444_v20 = vadd.f32 %v2037_v45, %v2171_v34  ;;  %v533_v59 = vadd.f32 %v2035_v44, %v2171_v34 }
 0x197   :  { %3431 = vst [vmem:[#allocation28_spill] sm:$0xff] %v2123_v2  ;;  %3432 = vst [vmem:[#allocation29_spill] sm:$0xff] %v2129_v6 }
 0x198   :  { %v2203_v58 = vmax.f32 %v444_v20, 0.0  ;;  %v2217_v14 = vmax.f32 %v533_v59, 0.0 }
 0x199   :  { %v2051_v55 = vpop.f32.mrb[6].mxu1  ;;  %v2053_v33 = vpop.f32.mrb[6].mxu0 }
 0x19a   :  { %v2055_v56 = vpop.f32.mrb[7].mxu1  ;;  %v2057_v57 = vpop.f32.mrb[7].mxu0  ;;  %577 = vrot.lane.b32.xlu0 %v2031_v35, %s1604_s9  ;;  %623 = vrot.lane.b32.xlu1 %v2025_v5, %s1605_s0  ;;  %3433 = vst [vmem:[#allocation30_spill] sm:$0xff] %v2203_v58  ;;  %v450_v30 = vadd.f32 %v2053_v33, %v2177_v63  ;;  %3434 = vst [vmem:[#allocation31_spill] sm:$0xff] %v2217_v14  ;;  %v539_v44 = vadd.f32 %v2051_v55, %v2177_v63 }
 0x19c   :  { %v2219_v20 = vmax.f32 %v450_v30, 0.0  ;;  %v2231_v51 = vmax.f32 %v539_v44, 0.0 }
 0x19e   :  { %625 = vrot.lane.b32.xlu0 %v2033_v40, %s1605_s0  ;;  %639 = vrot.lane.b32.xlu1 %v2027_v10, %s1605_s0  ;;  %3435 = vst [vmem:[#allocation32_spill] sm:$0xff] %v2219_v20  ;;  %3436 = vst [vmem:[#allocation33_spill] sm:$0xff] %v2231_v51 }
 0x1a2   :  { %641 = vrot.lane.b32.xlu0 %v2031_v35, %s1605_s0  ;;  %687 = vrot.lane.b32.xlu1 %v2025_v5, %s1606_s1 }
 0x1a6   :  { %689 = vrot.lane.b32.xlu0 %v2033_v40, %s1606_s1  ;;  %703 = vrot.lane.b32.xlu1 %v2027_v10, %s1606_s1 }
 0x1aa   :  { %705 = vrot.lane.b32.xlu0 %v2031_v35, %s1606_s1  ;;  %751 = vrot.lane.b32.xlu1 %v2025_v5, %s1607_s10 }
 0x1ae   :  { %753 = vrot.lane.b32.xlu0 %v2033_v40, %s1607_s10  ;;  %767 = vrot.lane.b32.xlu1 %v2027_v10, %s1607_s10 }
 0x1b2   :  { %769 = vrot.lane.b32.xlu0 %v2031_v35, %s1607_s10  ;;  %815 = vrot.lane.b32.xlu1 %v2025_v5, %s1608_s11 }
 0x1b6   :  { %817 = vrot.lane.b32.xlu0 %v2033_v40, %s1608_s11  ;;  %831 = vrot.lane.b32.xlu1 %v2027_v10, %s1608_s11 }
 0x1ba   :  { %833 = vrot.lane.b32.xlu0 %v2031_v35, %s1608_s11  ;;  %879 = vrot.lane.b32.xlu1 %v2025_v5, %s1609_s12 }
 0x1be   :  { %881 = vrot.lane.b32.xlu0 %v2033_v40, %s1609_s12  ;;  %895 = vrot.lane.b32.xlu1 %v2027_v10, %s1609_s12 }
 0x1c2   :  { %897 = vrot.lane.b32.xlu0 %v2031_v35, %s1609_s12  ;;  %943 = vrot.lane.b32.xlu1 %v2025_v5, %s1610_s13 }
 0x1c6   :  { %945 = vrot.lane.b32.xlu0 %v2033_v40, %s1610_s13  ;;  %959 = vrot.lane.b32.xlu1 %v2027_v10, %s1610_s13 }
 0x1ca   :  { %961 = vrot.lane.b32.xlu0 %v2031_v35, %s1610_s13  ;;  %1007 = vrot.lane.b32.xlu1 %v2025_v5, %s1612_s14 }
 0x1ce   :  { %1009 = vrot.lane.b32.xlu0 %v2033_v40, %s1612_s14  ;;  %1023 = vrot.lane.b32.xlu1 %v2027_v10, %s1612_s14 }
 0x1d2   :  { %1025 = vrot.lane.b32.xlu0 %v2031_v35, %s1612_s14  ;;  %567 = vrot.lane.b32.xlu1 %v2115_v28, %s1604_s9 }
 0x1d6   :  { %569 = vrot.lane.b32.xlu0 %v2123_v2, %s1604_s9  ;;  %583 = vrot.lane.b32.xlu1 %v2121_v60, %s1604_s9 }
 0x1da   :  { %585 = vrot.lane.b32.xlu0 %v2129_v6, %s1604_s9  ;;  %631 = vrot.lane.b32.xlu1 %v2115_v28, %s1605_s0 }
 0x1de   :  { %633 = vrot.lane.b32.xlu0 %v2123_v2, %s1605_s0  ;;  %647 = vrot.lane.b32.xlu1 %v2121_v60, %s1605_s0 }
 0x1e2   :  { %649 = vrot.lane.b32.xlu0 %v2129_v6, %s1605_s0  ;;  %695 = vrot.lane.b32.xlu1 %v2115_v28, %s1606_s1 }
 0x1e6   :  { %697 = vrot.lane.b32.xlu0 %v2123_v2, %s1606_s1  ;;  %711 = vrot.lane.b32.xlu1 %v2121_v60, %s1606_s1 }
 0x1ea   :  { %713 = vrot.lane.b32.xlu0 %v2129_v6, %s1606_s1  ;;  %759 = vrot.lane.b32.xlu1 %v2115_v28, %s1607_s10 }
 0x1ee   :  { %761 = vrot.lane.b32.xlu0 %v2123_v2, %s1607_s10  ;;  %775 = vrot.lane.b32.xlu1 %v2121_v60, %s1607_s10 }
 0x1f2   :  { %777 = vrot.lane.b32.xlu0 %v2129_v6, %s1607_s10  ;;  %823 = vrot.lane.b32.xlu1 %v2115_v28, %s1608_s11 }
 0x1f6   :  { %825 = vrot.lane.b32.xlu0 %v2123_v2, %s1608_s11  ;;  %839 = vrot.lane.b32.xlu1 %v2121_v60, %s1608_s11 }
 0x1fa   :  { %841 = vrot.lane.b32.xlu0 %v2129_v6, %s1608_s11  ;;  %887 = vrot.lane.b32.xlu1 %v2115_v28, %s1609_s12 }
 0x1fe   :  { %889 = vrot.lane.b32.xlu0 %v2123_v2, %s1609_s12  ;;  %903 = vrot.lane.b32.xlu1 %v2121_v60, %s1609_s12 }
 0x202   :  { %905 = vrot.lane.b32.xlu0 %v2129_v6, %s1609_s12  ;;  %951 = vrot.lane.b32.xlu1 %v2115_v28, %s1610_s13 }
 0x204   :  { %v2179_v4 = vpop.permute.xlu1 %559 }
 0x206   :  { %953 = vrot.lane.b32.xlu0 %v2123_v2, %s1610_s13  ;;  %967 = vrot.lane.b32.xlu1 %v2121_v60, %s1610_s13 }
 0x208   :  { %v2185_v15 = vpop.permute.xlu1 %575  ;;  %v2187_v18 = vpop.permute.xlu0 %561 }
 0x20a   :  { %969 = vrot.lane.b32.xlu0 %v2129_v6, %s1610_s13  ;;  %1015 = vrot.lane.b32.xlu1 %v2115_v28, %s1612_s14 }
 0x20c   :  { %v2195_v25 = vpop.permute.xlu1 %623  ;;  %v2197_v26 = vpop.permute.xlu0 %577 }
 0x20e   :  { %1017 = vrot.lane.b32.xlu0 %v2123_v2, %s1612_s14  ;;  %1031 = vrot.lane.b32.xlu1 %v2121_v60, %s1612_s14 }
 0x210   :  { %v2209_v3 = vpop.permute.xlu1 %639  ;;  %v2211_v45 = vpop.permute.xlu0 %625 }
 0x212   :  { %1033 = vrot.lane.b32.xlu0 %v2129_v6, %s1612_s14  ;;  %563 = vrot.lane.b32.xlu1 %v2203_v58, %s1604_s9 }
 0x214   :  { %v2223_v12 = vpop.permute.xlu1 %687  ;;  %v2225_v33 = vpop.permute.xlu0 %641 }
 0x216   :  { %579 = vrot.lane.b32.xlu1 %v2217_v14, %s1604_s9  ;;  %565 = vrot.lane.b32.xlu0 %v2219_v20, %s1604_s9 }
 0x218   :  { %v2233_v10 = vpop.permute.xlu1 %703  ;;  %v2235_v59 = vpop.permute.xlu0 %689 }
 0x21a   :  { %627 = vrot.lane.b32.xlu1 %v2203_v58, %s1605_s0  ;;  %581 = vrot.lane.b32.xlu0 %v2231_v51, %s1604_s9 }
 0x21c   :  { %v2241_v55 = vpop.permute.xlu1 %751  ;;  %v2243_v30 = vpop.permute.xlu0 %705 }
 0x21e   :  { %643 = vrot.lane.b32.xlu1 %v2217_v14, %s1605_s0  ;;  %629 = vrot.lane.b32.xlu0 %v2219_v20, %s1605_s0 }
 0x220   :  { %v2249_v44 = vpop.permute.xlu1 %767  ;;  %v2251_v35 = vpop.permute.xlu0 %753 }
 0x222   :  { %691 = vrot.lane.b32.xlu1 %v2203_v58, %s1606_s1  ;;  %645 = vrot.lane.b32.xlu0 %v2231_v51, %s1605_s0 }
 0x224   :  { %v2257_v5 = vpop.permute.xlu1 %815  ;;  %v2259_v40 = vpop.permute.xlu0 %769 }
 0x226   :  { %707 = vrot.lane.b32.xlu1 %v2217_v14, %s1606_s1  ;;  %693 = vrot.lane.b32.xlu0 %v2219_v20, %s1606_s1 }
 0x228   :  { %v2265_v6 = vpop.permute.xlu1 %831  ;;  %v2267_v60 = vpop.permute.xlu0 %817 }
 0x22a   :  { %755 = vrot.lane.b32.xlu1 %v2203_v58, %s1607_s10  ;;  %709 = vrot.lane.b32.xlu0 %v2231_v51, %s1606_s1 }
 0x22c   :  { %v2273_v2 = vpop.permute.xlu1 %879  ;;  %v2275_v28 = vpop.permute.xlu0 %833 }
 0x22e   :  { %771 = vrot.lane.b32.xlu1 %v2217_v14, %s1607_s10  ;;  %757 = vrot.lane.b32.xlu0 %v2219_v20, %s1607_s10 }
 0x230   :  { %v2281_v27 = vpop.permute.xlu1 %895  ;;  %v2283_v37 = vpop.permute.xlu0 %881 }
 0x231   :  { %3437 = vst [vmem:[#allocation34_spill] sm:$0xff] %v2283_v37 }
 0x232   :  { %819 = vrot.lane.b32.xlu1 %v2203_v58, %s1608_s11  ;;  %773 = vrot.lane.b32.xlu0 %v2231_v51, %s1607_s10 }
 0x234   :  { %v2289_v36 = vpop.permute.xlu1 %943  ;;  %v2291_v46 = vpop.permute.xlu0 %897 }
 0x235   :  { %3438 = vst [vmem:[#allocation35_spill] sm:$0xff] %v2289_v36  ;;  %3439 = vst [vmem:[#allocation36_spill] sm:$0xff] %v2291_v46 }
 0x236   :  { %835 = vrot.lane.b32.xlu1 %v2217_v14, %s1608_s11  ;;  %821 = vrot.lane.b32.xlu0 %v2219_v20, %s1608_s11 }
 0x238   :  { %v2297_v21 = vpop.permute.xlu1 %959  ;;  %v2299_v53 = vpop.permute.xlu0 %945 }
 0x239   :  { %3440 = vst [vmem:[#allocation37_spill] sm:$0xff] %v2297_v21  ;;  %3441 = vst [vmem:[#allocation38_spill] sm:$0xff] %v2299_v53 }
 0x23a   :  { %883 = vrot.lane.b32.xlu1 %v2203_v58, %s1609_s12  ;;  %837 = vrot.lane.b32.xlu0 %v2231_v51, %s1608_s11 }
 0x23c   :  { %v2305_v52 = vpop.permute.xlu1 %1007  ;;  %v2307_v49 = vpop.permute.xlu0 %961 }
 0x23d   :  { %3442 = vst [vmem:[#allocation39_spill] sm:$0xff] %v2305_v52  ;;  %3443 = vst [vmem:[#allocation40_spill] sm:$0xff] %v2307_v49  ;;  %v446_v52 = vadd.f32 %v2043_v13, %v2171_v34  ;;  %v452_v13 = vadd.f32 %v2057_v57, %v2177_v63 }
 0x23e   :  { %899 = vrot.lane.b32.xlu1 %v2217_v14, %s1609_s12  ;;  %885 = vrot.lane.b32.xlu0 %v2219_v20, %s1609_s12 }
 0x23f   :  { %v2334_v11 = vmax.f32 %v446_v52, 0.0  ;;  %v2355_v37 = vmax.f32 %v452_v13, 0.0 }
 0x240   :  { %v2313_v36 = vpop.permute.xlu1 %1023  ;;  %v2315_v21 = vpop.permute.xlu0 %1009 }
 0x241   :  { %3444 = vst [vmem:[#allocation41_spill] sm:$0xff] %v2313_v36  ;;  %3445 = vst [vmem:[#allocation42_spill] sm:$0xff] %v2315_v21  ;;  %v535_v21 = vadd.f32 %v2039_v8, %v2171_v34 }
 0x242   :  { %947 = vrot.lane.b32.xlu1 %v2203_v58, %s1610_s13  ;;  %901 = vrot.lane.b32.xlu0 %v2231_v51, %s1609_s12  ;;  %3447 = vst [vmem:[#allocation44_spill] sm:$0xff] %v2334_v11  ;;  %3449 = vst [vmem:[#allocation46_spill] sm:$0xff] %v2355_v37 }
 0x243   :  { %v2348_v52 = vmax.f32 %v535_v21, 0.0 }
 0x244   :  { %v568_v53 = vpop.permute.xlu1 %567  ;;  %v2323_v49 = vpop.permute.xlu0 %1025 }
 0x245   :  { %3446 = vst [vmem:[#allocation43_spill] sm:$0xff] %v2323_v49  ;;  %v599_v36 = vsel %vm68_vm1, %v2179_v4, %v568_v53  ;;  %3448 = vst [vmem:[#allocation45_spill] sm:$0xff] %v2348_v52  ;;  %v595_v46 = vsel %vm68_vm1, %v568_v53, %v2185_v15 }
 0x246   :  { %963 = vrot.lane.b32.xlu1 %v2217_v14, %s1610_s13  ;;  %949 = vrot.lane.b32.xlu0 %v2219_v20, %s1610_s13  ;;  %v608_v48 = vmul.f32 %v599_v36, %v1775_v31  ;;  %v541_v36 = vadd.f32 %v2055_v56, %v2177_v63 }
 0x248   :  { %v584_v50 = vpop.permute.xlu1 %583  ;;  %v570_v49 = vpop.permute.xlu0 %569 }
 0x249   :  { %v600_v14 = vsel %vm68_vm1, %v2187_v18, %v570_v49  ;;  %v603_v8 = vsel %vm68_vm1, %v584_v50, %v2179_v4  ;;  %v591_v57 = vsel %vm68_vm1, %v2185_v15, %v584_v50 }
 0x24a   :  { %v612_v34 = vmul.f32 %v600_v14, %v1775_v31  ;;  %571 = vrot.lane.b32.xlu1 %v2334_v11, %s1604_s9  ;;  %965 = vrot.lane.b32.xlu0 %v2231_v51, %s1610_s13  ;;  %v596_v14 = vsel %vm68_vm1, %v570_v49, %v2197_v26  ;;  %v607_v50 = vmul.f32 %v603_v8, %v1793_v38 }
 0x24b   :  { %v610_v63 = vmul.f32 %v591_v57, %v1801_v41  ;;  %v613_v15 = vmul.f32 %v596_v14, %v1807_v43 }
 0x24c   :  { %v632_v4 = vpop.permute.xlu1 %631  ;;  %v586_v31 = vpop.permute.xlu0 %585  ;;  %v1433_v21 = vpack.c.bf16 %v612_v34, %v608_v48 }
 0x24d   :  { %v592_v13 = vsel %vm68_vm1, %v2197_v26, %v586_v31  ;;  %v604_v56 = vsel %vm68_vm1, %v586_v31, %v2187_v18  ;;  %v663_v48 = vsel %vm101_vm2, %v2195_v25, %v632_v4  ;;  %v659_v26 = vsel %vm101_vm2, %v632_v4, %v2209_v3 }
 0x24e   :  { %v611_v49 = vmul.f32 %v604_v56, %v1793_v38  ;;  %v614_v53 = vmul.f32 %v592_v13, %v1801_v41  ;;  %587 = vrot.lane.b32.xlu1 %v2348_v52, %s1604_s9  ;;  %573 = vrot.lane.b32.xlu0 %v2355_v37, %s1604_s9  ;;  %v2386_v31 = vmax.f32 %v541_v36, 0.0  ;;  %v609_v13 = vmul.f32 %v595_v46, %v1807_v43 }
 0x24f   :  { %1434 = vmatprep.subr.bf16.mxu0 %v1433_v21  ;;  %v2390_v56 = vmul.f32 %v663_v48, %v1778_v32  ;;  %v2399_v36 = vmul.f32 %v659_v26, %v1814_v47 }
 0x250   :  { %3450 = vst [vmem:[#allocation47_spill] sm:$0xff] %v2386_v31  ;;  %v1435_v18 = vpack.c.bf16 %v611_v49, %v607_v50  ;;  %v648_v8 = vpop.permute.xlu1 %647  ;;  %v634_v34 = vpop.permute.xlu0 %633  ;;  %v1505_v57 = vpack.c.bf16 %v614_v53, %v610_v63  ;;  %v1507_v63 = vpack.c.bf16 %v613_v15, %v609_v13 }
 0x251   :  { %v660_v14 = vsel %vm101_vm2, %v634_v34, %v2225_v33  ;;  %v664_v4 = vsel %vm101_vm2, %v2211_v45, %v634_v34  ;;  %v667_v21 = vsel %vm101_vm2, %v648_v8, %v2195_v25  ;;  %v655_v48 = vsel %vm101_vm2, %v2209_v3, %v648_v8 }
 0x252   :  { %v2405_v46 = vmul.f32 %v664_v4, %v1778_v32  ;;  %v2408_v50 = vmul.f32 %v660_v14, %v1814_v47  ;;  %635 = vrot.lane.b32.xlu1 %v2334_v11, %s1605_s0  ;;  %589 = vrot.lane.b32.xlu0 %v2386_v31, %s1604_s9  ;;  %v2422_v34 = vmul.f32 %v667_v21, %v1796_v39 }
 0x253   :  { %1436 = vmatpush1.bf16.msra.mxu0 %v1435_v18  ;;  %1506 = vmatprep.subr.bf16.mxu1 %v1505_v57  ;;  %v2431_v18 = vmul.f32 %v655_v48, %v1804_v42 }
 0x254   :  { %v696_v49 = vpop.permute.xlu1 %695  ;;  %v650_v53 = vpop.permute.xlu0 %649  ;;  %1508 = vmatpush1.bf16.msra.mxu1 %v1507_v63 }
 0x255   :  { %v656_v3 = vsel %vm101_vm2, %v2225_v33, %v650_v53  ;;  %v668_v15 = vsel %vm101_vm2, %v650_v53, %v2211_v45  ;;  %v727_v8 = vsel %vm134_vm3, %v2223_v12, %v696_v49  ;;  %v723_v45 = vsel %vm134_vm3, %v696_v49, %v2233_v10 }
 0x256   :  { %v2437_v57 = vmul.f32 %v668_v15, %v1796_v39  ;;  %v2440_v13 = vmul.f32 %v656_v3, %v1804_v42  ;;  %651 = vrot.lane.b32.xlu1 %v2348_v52, %s1605_s0  ;;  %637 = vrot.lane.b32.xlu0 %v2355_v37, %s1605_s0  ;;  %v2454_v63 = vmul.f32 %v727_v8, %v1837_v7 }
 0x257   :  { %v2463_v53 = vmul.f32 %v723_v45, %v1848_v17 }
 0x258   :  { %v712_v14 = vpop.permute.xlu1 %711  ;;  %v698_v4 = vpop.permute.xlu0 %697 }
 0x259   :  { %v724_v48 = vsel %vm134_vm3, %v698_v4, %v2243_v30  ;;  %v728_v49 = vsel %vm134_vm3, %v2235_v59, %v698_v4  ;;  %3451 = vst [vmem:[#allocation48_spill] sm:$0xff] %v2463_v53  ;;  %v731_v3 = vsel %vm134_vm3, %v712_v14, %v2223_v12  ;;  %v719_v4 = vsel %vm134_vm3, %v2233_v10, %v712_v14 }
 0x25a   :  { %v2469_v15 = vmul.f32 %v728_v49, %v1837_v7  ;;  %v2472_v8 = vmul.f32 %v724_v48, %v1848_v17  ;;  %699 = vrot.lane.b32.xlu1 %v2334_v11, %s1606_s1  ;;  %653 = vrot.lane.b32.xlu0 %v2386_v31, %s1605_s0  ;;  %v2486_v48 = vmul.f32 %v731_v3, %v1845_v16 }
 0x25b   :  { %v2495_v14 = vmul.f32 %v719_v4, %v1851_v19 }
 0x25c   :  { %v760_v12 = vpop.permute.xlu1 %759  ;;  %v714_v25 = vpop.permute.xlu0 %713 }
 0x25d   :  { %v720_v33 = vsel %vm134_vm3, %v2243_v30, %v714_v25  ;;  %v732_v10 = vsel %vm134_vm3, %v714_v25, %v2235_v59  ;;  %v791_v45 = vsel %vm167_vm4, %v2241_v55, %v760_v12  ;;  %v787_v59 = vsel %vm167_vm4, %v760_v12, %v2249_v44 }
 0x25e   :  { %v2501_v49 = vmul.f32 %v732_v10, %v1845_v16  ;;  %v2504_v3 = vmul.f32 %v720_v33, %v1851_v19  ;;  %715 = vrot.lane.b32.xlu1 %v2348_v52, %s1606_s1  ;;  %701 = vrot.lane.b32.xlu0 %v2355_v37, %s1606_s1  ;;  %v2518_v33 = vmul.f32 %v791_v45, %v1840_v9 }
 0x25f   :  { %v2527_v26 = vmul.f32 %v787_v59, %v1859_v23 }
 0x260   :  { %v776_v25 = vpop.permute.xlu1 %775  ;;  %v762_v4 = vpop.permute.xlu0 %761 }
 0x261   :  { %v788_v21 = vsel %vm167_vm4, %v762_v4, %v2259_v40  ;;  %v792_v12 = vsel %vm167_vm4, %v2251_v35, %v762_v4  ;;  %3452 = vst [vmem:[#allocation49_spill] sm:$0xff] %v2527_v26  ;;  %v795_v30 = vsel %vm167_vm4, %v776_v25, %v2241_v55  ;;  %v783_v4 = vsel %vm167_vm4, %v2249_v44, %v776_v25 }
 0x262   :  { %v2533_v10 = vmul.f32 %v792_v12, %v1840_v9  ;;  %v2536_v45 = vmul.f32 %v788_v21, %v1859_v23  ;;  %763 = vrot.lane.b32.xlu1 %v2334_v11, %s1607_s10  ;;  %717 = vrot.lane.b32.xlu0 %v2386_v31, %s1606_s1  ;;  %v2550_v21 = vmul.f32 %v795_v30, %v1856_v22 }
 0x263   :  { %v2559_v25 = vmul.f32 %v783_v4, %v1866_v29 }
 0x264   :  { %3453 = vst [vmem:[#allocation50_spill] sm:$0xff] %v2536_v45  ;;  %v824_v55 = vpop.permute.xlu1 %823  ;;  %v778_v53 = vpop.permute.xlu0 %777  ;;  %3454 = vst [vmem:[#allocation51_spill] sm:$0xff] %v2550_v21 }
 0x265   :  { %v784_v23 = vsel %vm167_vm4, %v2259_v40, %v778_v53  ;;  %v796_v44 = vsel %vm167_vm4, %v778_v53, %v2251_v35  ;;  %v855_v59 = vsel %vm200_vm5, %v2257_v5, %v824_v55  ;;  %v851_v35 = vsel %vm200_vm5, %v824_v55, %v2265_v6 }
 0x266   :  { %v2565_v12 = vmul.f32 %v796_v44, %v1856_v22  ;;  %v2568_v30 = vmul.f32 %v784_v23, %v1866_v29  ;;  %779 = vrot.lane.b32.xlu1 %v2348_v52, %s1607_s10  ;;  %765 = vrot.lane.b32.xlu0 %v2355_v37, %s1607_s10  ;;  %v2582_v23 = vmul.f32 %v855_v59, %v1887_v61 }
 0x267   :  { %v2591_v45 = vmul.f32 %v851_v35, %v1895_v0 }
 0x268   :  { %3455 = vst [vmem:[#allocation52_spill] sm:$0xff] %v2565_v12  ;;  %v840_v53 = vpop.permute.xlu1 %839  ;;  %v826_v4 = vpop.permute.xlu0 %825  ;;  %3456 = vst [vmem:[#allocation53_spill] sm:$0xff] %v2582_v23  ;;  %v3465_v23 = vld [vmem:[#allocation36_spill] sm:$0xff] }
 0x269   :  { %v852_v26 = vsel %vm200_vm5, %v826_v4, %v2275_v28  ;;  %v856_v55 = vsel %vm200_vm5, %v2267_v60, %v826_v4  ;;  %3457 = vst [vmem:[#allocation54_spill] sm:$0xff] %v2591_v45  ;;  %v847_v40 = vsel %vm200_vm5, %v2265_v6, %v840_v53  ;;  %v859_v4 = vsel %vm200_vm5, %v840_v53, %v2257_v5 }
 0x26a   :  { %v2597_v44 = vmul.f32 %v856_v55, %v1887_v61  ;;  %v2600_v59 = vmul.f32 %v852_v26, %v1895_v0  ;;  %1011 = vrot.lane.b32.xlu1 %v2203_v58, %s1612_s14  ;;  %781 = vrot.lane.b32.xlu0 %v2386_v31, %s1607_s10  ;;  %v2614_v26 = vmul.f32 %v847_v40, %v1898_v1 }
 0x26b   :  { %v2623_v53 = vmul.f32 %v859_v4, %v1890_v62 }
 0x26c   :  { %3458 = vst [vmem:[#allocation55_spill] sm:$0xff] %v2597_v44  ;;  %3459 = vst [vmem:[#allocation56_spill] sm:$0xff] %v2600_v59  ;;  %v888_v6 = vpop.permute.xlu1 %887  ;;  %v842_v21 = vpop.permute.xlu0 %841 }
 0x26d   :  { %3460 = vst [vmem:[#allocation57_spill] sm:$0xff] %v2614_v26  ;;  %v848_v61 = vsel %vm200_vm5, %v2275_v28, %v842_v21  ;;  %v860_v5 = vsel %vm200_vm5, %v842_v21, %v2267_v60  ;;  %3461 = vst [vmem:[#allocation58_spill] sm:$0xff] %v2623_v53  ;;  %v919_v35 = vsel %vm233_vm7, %v2273_v2, %v888_v6  ;;  %v3483_v53 = vld [vmem:[#allocation15_spill] sm:$0xff] }
 0x26e   :  { %v2629_v55 = vmul.f32 %v848_v61, %v1898_v1  ;;  %v2632_v40 = vmul.f32 %v860_v5, %v1890_v62  ;;  %827 = vrot.lane.b32.xlu1 %v2334_v11, %s1608_s11  ;;  %v915_v28 = vsel %vm233_vm7, %v888_v6, %v2281_v27  ;;  %1013 = vrot.lane.b32.xlu0 %v2219_v20, %s1612_s14  ;;  %v3466_v62 = vld [vmem:[#allocation34_spill] sm:$0xff]  ;;  %v3467_v1 = vld [vmem:[#allocation11_spill] sm:$0xff] }
 0x26f   :  { %v2646_v5 = vmul.f32 %v919_v35, %v1944_v54  ;;  %v2655_v45 = vmul.f32 %v915_v28, %v3467_v1  ;;  %v3475_v28 = vld [vmem:[#allocation35_spill] sm:$0xff] }
 0x270   :  { %3462 = vst [vmem:[#allocation59_spill] sm:$0xff] %v2629_v55  ;;  %3463 = vst [vmem:[#allocation60_spill] sm:$0xff] %v2632_v40  ;;  %v904_v21 = vpop.permute.xlu1 %903  ;;  %v890_v4 = vpop.permute.xlu0 %889 }
 0x271   :  { %3464 = vst [vmem:[#allocation61_spill] sm:$0xff] %v2646_v5  ;;  %v916_v44 = vsel %vm233_vm7, %v890_v4, %v3465_v23  ;;  %v920_v6 = vsel %vm233_vm7, %v3466_v62, %v890_v4  ;;  %3468 = vst [vmem:[#allocation36_spill] sm:$0xff] %v2655_v45  ;;  %v911_v60 = vsel %vm233_vm7, %v2281_v27, %v904_v21 }
 0x272   :  { %v2661_v61 = vmul.f32 %v920_v6, %v1944_v54  ;;  %v2664_v35 = vmul.f32 %v916_v44, %v3467_v1  ;;  %843 = vrot.lane.b32.xlu1 %v2348_v52, %s1608_s11  ;;  %v923_v4 = vsel %vm233_vm7, %v904_v21, %v2273_v2  ;;  %1029 = vrot.lane.b32.xlu0 %v2231_v51, %s1612_s14  ;;  %v3471_v44 = vld [vmem:[#allocation14_spill] sm:$0xff] }
 0x273   :  { %v2678_v54 = vmul.f32 %v911_v60, %v3471_v44  ;;  %v3473_v21 = vld [vmem:[#allocation10_spill] sm:$0xff] }
 0x274   :  { %3469 = vst [vmem:[#allocation34_spill] sm:$0xff] %v2661_v61  ;;  %3470 = vst [vmem:[#allocation62_spill] sm:$0xff] %v2664_v35  ;;  %v952_v27 = vpop.permute.xlu1 %951  ;;  %v906_v26 = vpop.permute.xlu0 %905  ;;  %v2687_v55 = vmul.f32 %v923_v4, %v3473_v21  ;;  %v3482_v35 = vld [vmem:[#allocation38_spill] sm:$0xff] }
 0x275   :  { %3472 = vst [vmem:[#allocation63_spill] sm:$0xff] %v2678_v54  ;;  %v912_v1 = vsel %vm233_vm7, %v3465_v23, %v906_v26  ;;  %v924_v2 = vsel %vm233_vm7, %v906_v26, %v3466_v62  ;;  %v983_v5 = vsel %vm266_vm6, %v3475_v28, %v952_v27  ;;  %v3478_v23 = vld [vmem:[#allocation37_spill] sm:$0xff] }
 0x276   :  { %3474 = vst [vmem:[#allocation64_spill] sm:$0xff] %v2687_v55  ;;  %v2693_v6 = vmul.f32 %v912_v1, %v3471_v44  ;;  %v2696_v60 = vmul.f32 %v924_v2, %v3473_v21  ;;  %891 = vrot.lane.b32.xlu1 %v2334_v11, %s1609_s12  ;;  %v979_v62 = vsel %vm266_vm6, %v952_v27, %v3478_v23  ;;  %v3479_v2 = vld [vmem:[#allocation12_spill] sm:$0xff]  ;;  %v3499_v55 = vld [vmem:[#allocation19_spill] sm:$0xff] }
 0x277   :  { %829 = vrot.lane.b32.xlu0 %v2355_v37, %s1608_s11  ;;  %v2710_v21 = vmul.f32 %v983_v5, %v3479_v2  ;;  %v3481_v44 = vld [vmem:[#allocation40_spill] sm:$0xff]  ;;  %v2719_v40 = vmul.f32 %v979_v62, %v3483_v53  ;;  %v3491_v62 = vld [vmem:[#allocation39_spill] sm:$0xff] }
 0x278   :  { %3476 = vst [vmem:[#allocation35_spill] sm:$0xff] %v2693_v6  ;;  %3477 = vst [vmem:[#allocation65_spill] sm:$0xff] %v2696_v60  ;;  %v968_v4 = vpop.permute.xlu1 %967  ;;  %v954_v61 = vpop.permute.xlu0 %953 }
 0x279   :  { %3480 = vst [vmem:[#allocation37_spill] sm:$0xff] %v2710_v21  ;;  %v980_v45 = vsel %vm266_vm6, %v954_v61, %v3481_v44  ;;  %v984_v27 = vsel %vm266_vm6, %v3482_v35, %v954_v61  ;;  %3484 = vst [vmem:[#allocation40_spill] sm:$0xff] %v2719_v40  ;;  %v975_v26 = vsel %vm266_vm6, %v3478_v23, %v968_v4 }
 0x27a   :  { %v2725_v1 = vmul.f32 %v984_v27, %v3479_v2  ;;  %v2728_v5 = vmul.f32 %v980_v45, %v3483_v53  ;;  %907 = vrot.lane.b32.xlu1 %v2348_v52, %s1609_s12  ;;  %v987_v61 = vsel %vm266_vm6, %v968_v4, %v3475_v28  ;;  %v3487_v45 = vld [vmem:[#allocation16_spill] sm:$0xff]  ;;  %v3489_v4 = vld [vmem:[#allocation13_spill] sm:$0xff] }
 0x27b   :  { %845 = vrot.lane.b32.xlu0 %v2386_v31, %s1608_s11  ;;  %v2742_v2 = vmul.f32 %v975_v26, %v3487_v45  ;;  %v2751_v6 = vmul.f32 %v987_v61, %v3489_v4 }
 0x27c   :  { %3485 = vst [vmem:[#allocation38_spill] sm:$0xff] %v2725_v1  ;;  %3486 = vst [vmem:[#allocation66_spill] sm:$0xff] %v2728_v5  ;;  %v1016_v23 = vpop.permute.xlu1 %1015  ;;  %v970_v54 = vpop.permute.xlu0 %969  ;;  %v3498_v5 = vld [vmem:[#allocation42_spill] sm:$0xff] }
 0x27d   :  { %3488 = vst [vmem:[#allocation67_spill] sm:$0xff] %v2742_v2  ;;  %v976_v53 = vsel %vm266_vm6, %v3481_v44, %v970_v54  ;;  %v988_v28 = vsel %vm266_vm6, %v970_v54, %v3482_v35  ;;  %3490 = vst [vmem:[#allocation68_spill] sm:$0xff] %v2751_v6  ;;  %v1047_v21 = vsel %vm299_vm8, %v3491_v62, %v1016_v23  ;;  %v3494_v44 = vld [vmem:[#allocation41_spill] sm:$0xff] }
 0x27e   :  { %v2757_v27 = vmul.f32 %v976_v53, %v3487_v45  ;;  %v2760_v26 = vmul.f32 %v988_v28, %v3489_v4  ;;  %955 = vrot.lane.b32.xlu1 %v2334_v11, %s1610_s13  ;;  %v1043_v54 = vsel %vm299_vm8, %v1016_v23, %v3494_v44  ;;  %v3495_v28 = vld [vmem:[#allocation21_spill] sm:$0xff]  ;;  %v3497_v45 = vld [vmem:[#allocation43_spill] sm:$0xff] }
 0x27f   :  { %893 = vrot.lane.b32.xlu0 %v2355_v37, %s1609_s12  ;;  %v2774_v4 = vmul.f32 %v3495_v28, %v1047_v21  ;;  %v2783_v60 = vmul.f32 %v3499_v55, %v1043_v54  ;;  %v3506_v54 = vld [vmem:[#allocation18_spill] sm:$0xff] }
 0x280   :  { %3492 = vst [vmem:[#allocation39_spill] sm:$0xff] %v2757_v27  ;;  %3493 = vst [vmem:[#allocation69_spill] sm:$0xff] %v2760_v26  ;;  %v1032_v61 = vpop.permute.xlu1 %1031  ;;  %v1018_v1 = vpop.permute.xlu0 %1017 }
 0x281   :  { %3496 = vst [vmem:[#allocation41_spill] sm:$0xff] %v2774_v4  ;;  %v1044_v40 = vsel %vm299_vm8, %v1018_v1, %v3497_v45  ;;  %v1048_v23 = vsel %vm299_vm8, %v3498_v5, %v1018_v1  ;;  %3500 = vst [vmem:[#allocation21_spill] sm:$0xff] %v2783_v60  ;;  %v1039_v35 = vsel %vm299_vm8, %v3494_v44, %v1032_v61  ;;  %v2804_v44 = vld [vmem:[%s3275_s5] sm:$0xff] }
 0x282   :  { %v2789_v53 = vmul.f32 %v3495_v28, %v1048_v23  ;;  %v2792_v21 = vmul.f32 %v3499_v55, %v1044_v40  ;;  %971 = vrot.lane.b32.xlu1 %v2348_v52, %s1610_s13  ;;  %v1051_v1 = vsel %vm299_vm8, %v1032_v61, %v3491_v62  ;;  %3503 = vst [vmem:[#allocation19_spill] sm:$0xff] %v2804_v44  ;;  %v3504_v62 = vld [vmem:[#allocation20_spill] sm:$0xff] }
 0x283   :  { %909 = vrot.lane.b32.xlu0 %v2386_v31, %s1609_s12  ;;  %v1081_v23 = vcombine.high %v2804_v44, %v2804_v44  ;;  %v2813_v61 = vmul.f32 %v3504_v62, %v1039_v35  ;;  %v2822_v4 = vmul.f32 %v3506_v54, %v1051_v1  ;;  %v3510_v1 = vld [vmem:[#allocation31_spill] sm:$0xff] }
 0x284   :  { %3501 = vst [vmem:[#allocation43_spill] sm:$0xff] %v2789_v53  ;;  %3502 = vst [vmem:[#allocation42_spill] sm:$0xff] %v2792_v21  ;;  %v564_v55 = vpop.permute.xlu1 %563  ;;  %v1034_v40 = vpop.permute.xlu0 %1033 }
 0x285   :  { %3505 = vst [vmem:[#allocation20_spill] sm:$0xff] %v2813_v61  ;;  %v1040_v2 = vsel %vm299_vm8, %v3497_v45, %v1034_v40  ;;  %v1052_v27 = vsel %vm299_vm8, %v1034_v40, %v3498_v5  ;;  %3507 = vst [vmem:[#allocation18_spill] sm:$0xff] %v2822_v4  ;;  %1150 = vmatprep.mubr.f32.mxu0 %v1081_v23  ;;  %1292 = vmatprep.mubr.f32.mxu1 %v1081_v23  ;;  %v1073_v40 = vld [vmem:[%s3276_s6] sm:$0xf] }
 0x286   :  { %v2825_v53 = vmul.f32 %v3504_v62, %v1040_v2  ;;  %v2828_v28 = vmul.f32 %v3506_v54, %v1052_v27  ;;  %1019 = vrot.lane.b32.xlu1 %v2334_v11, %s1612_s14 }
 0x287   :  { %957 = vrot.lane.b32.xlu0 %v2355_v37, %s1610_s13 }
 0x288   :  { %3508 = vst [vmem:[#allocation70_spill] sm:$0xff] %v2825_v53  ;;  %3509 = vst [vmem:[#allocation71_spill] sm:$0xff] %v2828_v28  ;;  %v580_v45 = vpop.permute.xlu1 %579  ;;  %v566_v35 = vpop.permute.xlu0 %565 }
 0x28a   :  { %1027 = vrot.lane.b32.xlu1 %v3510_v1, %s1612_s14 }
 0x28b   :  { %973 = vrot.lane.b32.xlu0 %v2386_v31, %s1610_s13 }
 0x28c   :  { %v2842_v27 = vpop.permute.xlu1 %627  ;;  %v582_v54 = vpop.permute.xlu0 %581 }
 0x28e   :  { %1035 = vrot.lane.b32.xlu1 %v2348_v52, %s1612_s14 }
 0x28f   :  { %1021 = vrot.lane.b32.xlu0 %v2355_v37, %s1612_s14 }
 0x290   :  { %v2851_v23 = vpop.permute.xlu1 %643  ;;  %v2853_v62 = vpop.permute.xlu0 %629 }
 0x292   :  { %1076 = vperm.xlu1 %1596, %v1073_v40  }
 0x293   :  { %1037 = vrot.lane.b32.xlu0 %v2386_v31, %s1612_s14 }
 0x294   :  { %v2857_v5 = vpop.permute.xlu1 %691  ;;  %v2859_v2 = vpop.permute.xlu0 %645 }
 0x298   :  { %v2861_v61 = vpop.permute.xlu1 %707  ;;  %v2863_v53 = vpop.permute.xlu0 %693 }
 0x29c   :  { %v2865_v44 = vpop.permute.xlu1 %755  ;;  %v2867_v4 = vpop.permute.xlu0 %709 }
 0x2a0   :  { %v2869_v28 = vpop.permute.xlu1 %771  ;;  %v2871_v60 = vpop.permute.xlu0 %757 }
 0x2a4   :  { %v2873_v40 = vpop.permute.xlu1 %819  ;;  %v2875_v21 = vpop.permute.xlu0 %773 }
 0x2a5   :  { %3511 = vst [vmem:[#allocation72_spill] sm:$0xff] %v2873_v40 }
 0x2a8   :  { %v2877_v6 = vpop.permute.xlu1 %835  ;;  %v2879_v26 = vpop.permute.xlu0 %821 }
 0x2a9   :  { %3512 = vst [vmem:[#allocation73_spill] sm:$0xff] %v2877_v6  ;;  %3513 = vst [vmem:[#allocation74_spill] sm:$0xff] %v2879_v26 }
 0x2ac   :  { %v2881_v59 = vpop.permute.xlu1 %883  ;;  %v2883_v0 = vpop.permute.xlu0 %837 }
 0x2ad   :  { %3514 = vst [vmem:[#allocation75_spill] sm:$0xff] %v2881_v59  ;;  %3515 = vst [vmem:[#allocation76_spill] sm:$0xff] %v2883_v0 }
 0x2b0   :  { %v2885_v51 = vpop.permute.xlu1 %899  ;;  %v2887_v1 = vpop.permute.xlu0 %885 }
 0x2b1   :  { %3516 = vst [vmem:[#allocation77_spill] sm:$0xff] %v2885_v51  ;;  %3517 = vst [vmem:[#allocation78_spill] sm:$0xff] %v2887_v1  ;;  %v3523_v1 = vld [vmem:[#allocation2_spill] sm:$0xff] }
 0x2b4   :  { %v2889_v20 = vpop.permute.xlu1 %947  ;;  %v2891_v58 = vpop.permute.xlu0 %901 }
 0x2b5   :  { %3518 = vst [vmem:[#allocation79_spill] sm:$0xff] %v2889_v20  ;;  %3519 = vst [vmem:[#allocation80_spill] sm:$0xff] %v2891_v58 }
 0x2b8   :  { %v2893_v31 = vpop.permute.xlu1 %963  ;;  %v2895_v40 = vpop.permute.xlu0 %949 }
 0x2b9   :  { %3520 = vst [vmem:[#allocation81_spill] sm:$0xff] %v2893_v31  ;;  %3521 = vst [vmem:[#allocation82_spill] sm:$0xff] %v2895_v40 }
 0x2bc   :  { %v572_v52 = vpop.permute.xlu1 %571  ;;  %v2897_v6 = vpop.permute.xlu0 %965 }
 0x2bd   :  { %3522 = vst [vmem:[#allocation83_spill] sm:$0xff] %v2897_v6  ;;  %v601_v59 = vsel %vm68_vm1, %v564_v55, %v572_v52  ;;  %v597_v11 = vsel %vm68_vm1, %v572_v52, %v580_v45 }
 0x2be   :  { %v616_v37 = vmul.f32 %v601_v59, %v3523_v1  ;;  %v617_v52 = vmul.f32 %v597_v11, %v1807_v43  ;;  %v3524_v11 = vpack.c.bf16 %v2405_v46, %v2390_v56 }
 0x2c0   :  { %v588_v26 = vpop.permute.xlu1 %587  ;;  %v574_v0 = vpop.permute.xlu0 %573 }
 0x2c1   :  { %v602_v51 = vsel %vm68_vm1, %v566_v35, %v574_v0  ;;  %v598_v20 = vsel %vm68_vm1, %v574_v0, %v582_v54  ;;  %v593_v40 = vsel %vm68_vm1, %v580_v45, %v588_v26  ;;  %v605_v6 = vsel %vm68_vm1, %v588_v26, %v564_v55 }
 0x2c2   :  { %v620_v31 = vmul.f32 %v602_v51, %v3523_v1  ;;  %v621_v22 = vmul.f32 %v598_v20, %v1807_v43  ;;  %v615_v51 = vmul.f32 %v605_v6, %v1793_v38  ;;  %v618_v1 = vmul.f32 %v593_v40, %v1801_v41 }
 0x2c3   :  { %v3525_v40 = vpack.c.bf16 %v2440_v13, %v2431_v18  ;;  %v3526_v13 = vpack.c.bf16 %v2437_v57, %v2422_v34 }
 0x2c4   :  { %v636_v58 = vpop.permute.xlu1 %635  ;;  %v590_v12 = vpop.permute.xlu0 %589  ;;  %v1437_v29 = vpack.c.bf16 %v620_v31, %v616_v37 }
 0x2c5   :  { %v594_v59 = vsel %vm68_vm1, %v582_v54, %v590_v12  ;;  %v606_v0 = vsel %vm68_vm1, %v590_v12, %v566_v35  ;;  %v665_v37 = vsel %vm101_vm2, %v2842_v27, %v636_v58  ;;  %v1511_v12 = vpack.c.bf16 %v621_v22, %v617_v52 }
 0x2c6   :  { %v619_v26 = vmul.f32 %v606_v0, %v1793_v38  ;;  %v622_v55 = vmul.f32 %v594_v59, %v1801_v41  ;;  %1438 = vmatprep.subr.bf16.mxu0 %v1437_v29  ;;  %v680_v38 = vmul.f32 %v665_v37, %v1778_v32 }
 0x2c8   :  { %v652_v20 = vpop.permute.xlu1 %651  ;;  %v1439_v31 = vpack.c.bf16 %v619_v26, %v615_v51  ;;  %v638_v45 = vpop.permute.xlu0 %637  ;;  %v1509_v54 = vpack.c.bf16 %v622_v55, %v618_v1 }
 0x2c9   :  { %v666_v6 = vsel %vm101_vm2, %v2853_v62, %v638_v45  ;;  %v662_v41 = vsel %vm101_vm2, %v638_v45, %v2859_v2  ;;  %v657_v29 = vsel %vm101_vm2, %v2851_v23, %v652_v20  ;;  %v669_v22 = vsel %vm101_vm2, %v652_v20, %v2842_v27 }
 0x2ca   :  { %v684_v43 = vmul.f32 %v666_v6, %v1778_v32  ;;  %1440 = vmatpush1.bf16.msra.mxu0 %v1439_v31  ;;  %1510 = vmatprep.subr.bf16.mxu1 %v1509_v54  ;;  %v661_v32 = vsel %vm101_vm2, %v636_v58, %v2851_v23  ;;  %v685_v51 = vmul.f32 %v662_v41, %v1814_v47 }
 0x2cb   :  { %1442 = vmatprep.subr.bf16.mxu0 %v3524_v11  ;;  %1512 = vmatpush1.bf16.msra.mxu1 %v1511_v12  ;;  %v679_v46 = vmul.f32 %v669_v22, %v1796_v39  ;;  %v682_v58 = vmul.f32 %v657_v29, %v1804_v42  ;;  %v681_v1 = vmul.f32 %v661_v32, %v1814_v47 }
 0x2cc   :  { %v700_v35 = vpop.permute.xlu1 %699  ;;  %1514 = vmatprep.subr.bf16.mxu1 %v3525_v40  ;;  %v654_v59 = vpop.permute.xlu0 %653  ;;  %v1445_v0 = vpack.c.bf16 %v684_v43, %v680_v38  ;;  %v3528_v20 = vpack.c.bf16 %v2469_v15, %v2454_v63  ;;  %v3529_v45 = vpack.c.bf16 %v2504_v3, %v2495_v14  ;;  %v3530_v3 = vpack.c.bf16 %v2501_v49, %v2486_v48 }
 0x2cd   :  { %v658_v27 = vsel %vm101_vm2, %v2859_v2, %v654_v59  ;;  %v670_v56 = vsel %vm101_vm2, %v654_v59, %v2853_v62  ;;  %v729_v2 = vsel %vm134_vm3, %v2857_v5, %v700_v35  ;;  %v3527_v62 = vpack.c.bf16 %v2408_v50, %v2399_v36 }
 0x2ce   :  { %v683_v23 = vmul.f32 %v670_v56, %v1796_v39  ;;  %v686_v18 = vmul.f32 %v658_v27, %v1804_v42  ;;  %1444 = vmatpush1.bf16.msra.mxu0 %v3526_v13  ;;  %v1519_v42 = vpack.c.bf16 %v685_v51, %v681_v1  ;;  %v744_v47 = vmul.f32 %v729_v2, %v1837_v7  ;;  %v3535_v56 = vld [vmem:[#allocation4_spill] sm:$0xff]  ;;  %v3539_v13 = vld [vmem:[#allocation51_spill] sm:$0xff] }
 0x2cf   :  { %1446 = vmatprep.subr.bf16.mxu0 %v1445_v0  ;;  %1516 = vmatpush1.bf16.msra.mxu1 %v3527_v62  ;;  %v3533_v40 = vpack.c.bf16 %v2533_v10, %v2518_v33  ;;  %v3534_v0 = vpack.c.bf16 %v2568_v30, %v2559_v25  ;;  %v3538_v30 = vld [vmem:[#allocation52_spill] sm:$0xff]  ;;  %v3542_v62 = vld [vmem:[#allocation49_spill] sm:$0xff] }
 0x2d0   :  { %v716_v26 = vpop.permute.xlu1 %715  ;;  %v1447_v55 = vpack.c.bf16 %v683_v23, %v679_v46  ;;  %v702_v39 = vpop.permute.xlu0 %701  ;;  %v1517_v52 = vpack.c.bf16 %v686_v18, %v682_v58  ;;  %v3537_v23 = vld [vmem:[#allocation5_spill] sm:$0xff]  ;;  %v3540_v1 = vpack.c.bf16 %v3538_v30, %v3539_v13 }
 0x2d1   :  { %v730_v34 = vsel %vm134_vm3, %v2863_v53, %v702_v39  ;;  %v726_v57 = vsel %vm134_vm3, %v702_v39, %v2867_v4  ;;  %v721_v36 = vsel %vm134_vm3, %v2861_v61, %v716_v26  ;;  %v733_v50 = vsel %vm134_vm3, %v716_v26, %v2857_v5 }
 0x2d2   :  { %v748_v37 = vmul.f32 %v730_v34, %v1837_v7  ;;  %1448 = vmatpush1.bf16.msra.mxu0 %v1447_v55  ;;  %1518 = vmatprep.subr.bf16.mxu1 %v1517_v52  ;;  %v725_v7 = vsel %vm134_vm3, %v700_v35, %v2861_v61  ;;  %v749_v6 = vmul.f32 %v726_v57, %v1848_v17  ;;  %v3544_v34 = vld [vmem:[#allocation26_spill] sm:$0xff] }
 0x2d3   :  { %1450 = vmatprep.subr.bf16.mxu0 %v3528_v20  ;;  %1520 = vmatpush1.bf16.msra.mxu1 %v1519_v42  ;;  %v743_v15 = vmul.f32 %v733_v50, %v1845_v16  ;;  %v746_v61 = vmul.f32 %v721_v36, %v1851_v19  ;;  %v745_v41 = vmul.f32 %v725_v7, %v1848_v17  ;;  %v3547_v36 = vld [vmem:[#allocation29_spill] sm:$0xff]  ;;  %v3548_v7 = vld [vmem:[#allocation44_spill] sm:$0xff] }
 0x2d4   :  { %v764_v31 = vpop.permute.xlu1 %763  ;;  %1522 = vmatprep.subr.bf16.mxu1 %v3529_v45  ;;  %v718_v54 = vpop.permute.xlu0 %717  ;;  %v1453_v12 = vpack.c.bf16 %v748_v37, %v744_v47  ;;  %v3545_v47 = vld [vmem:[#allocation28_spill] sm:$0xff]  ;;  %v3546_v37 = vld [vmem:[#allocation27_spill] sm:$0xff]  ;;  %v3549_v45 = vld [vmem:[#allocation46_spill] sm:$0xff] }
 0x2d5   :  { %v722_v5 = vsel %vm134_vm3, %v2867_v4, %v718_v54  ;;  %v734_v63 = vsel %vm134_vm3, %v718_v54, %v2863_v53  ;;  %v793_v4 = vsel %vm167_vm4, %v2865_v44, %v764_v31  ;;  %v3531_v53 = vld [vmem:[#allocation48_spill] sm:$0xff]  ;;  %v1465_v57 = vpack.c.bf16 %v3545_v47, %v3544_v34  ;;  %v3576_v34 = vld [vmem:[#allocation55_spill] sm:$0xff]  ;;  %v3577_v47 = vld [vmem:[#allocation53_spill] sm:$0xff] }
 0x2d6   :  { %v747_v38 = vmul.f32 %v734_v63, %v1845_v16  ;;  %v750_v14 = vmul.f32 %v722_v5, %v1851_v19  ;;  %1452 = vmatpush1.bf16.msra.mxu0 %v3530_v3  ;;  %v3532_v43 = vpack.c.bf16 %v2472_v8, %v3531_v53  ;;  %v1527_v19 = vpack.c.bf16 %v749_v6, %v745_v41  ;;  %v3551_v6 = vld [vmem:[#allocation22_spill] sm:$0xff]  ;;  %v3553_v63 = vld [vmem:[#allocation45_spill] sm:$0xff]  ;;  %v3556_v3 = vld [vmem:[#allocation24_spill] sm:$0xff] }
 0x2d7   :  { %1454 = vmatprep.subr.bf16.mxu0 %v1453_v12  ;;  %v808_v17 = vmul.f32 %v793_v4, %v1840_v9  ;;  %v1537_v50 = vpack.c.bf16 %v3547_v36, %v3546_v37  ;;  %v1469_v54 = vpack.c.bf16 %v3549_v45, %v3548_v7  ;;  %v3550_v12 = vld [vmem:[#allocation25_spill] sm:$0xff]  ;;  %v3557_v41 = vld [vmem:[#allocation23_spill] sm:$0xff] }
 0x2d8   :  { %1524 = vmatpush1.bf16.msra.mxu1 %v3532_v43  ;;  %v780_v29 = vpop.permute.xlu1 %779  ;;  %v1455_v22 = vpack.c.bf16 %v747_v38, %v743_v15  ;;  %v766_v16 = vpop.permute.xlu0 %765  ;;  %v1525_v11 = vpack.c.bf16 %v750_v14, %v746_v61  ;;  %v3552_v5 = vpack.c.bf16 %v3550_v12, %v3551_v6  ;;  %v3554_v15 = vld [vmem:[#allocation47_spill] sm:$0xff]  ;;  %v3555_v38 = vld [vmem:[#allocation73_spill] sm:$0xff]  ;;  %v3558_v4 = vpack.c.bf16 %v3556_v3, %v3557_v41 }
 0x2d9   :  { %v794_v49 = vsel %vm167_vm4, %v2871_v60, %v766_v16  ;;  %v790_v48 = vsel %vm167_vm4, %v766_v16, %v2875_v21  ;;  %v785_v8 = vsel %vm167_vm4, %v2869_v28, %v780_v29  ;;  %v797_v32 = vsel %vm167_vm4, %v780_v29, %v2865_v44  ;;  %v3536_v44 = vld [vmem:[#allocation3_spill] sm:$0xff]  ;;  %v3559_v29 = vld [vmem:[#allocation30_spill] sm:$0xff]  ;;  %v3579_v37 = vld [vmem:[#allocation77_spill] sm:$0xff] }
 0x2da   :  { %v812_v35 = vmul.f32 %v794_v49, %v1840_v9  ;;  %1456 = vmatpush1.bf16.msra.mxu0 %v1455_v22  ;;  %1526 = vmatprep.subr.bf16.mxu1 %v1525_v11  ;;  %v789_v9 = vsel %vm167_vm4, %v764_v31, %v2869_v28  ;;  %v813_v46 = vmul.f32 %v790_v48, %v3535_v56  ;;  %v3560_v22 = vld [vmem:[#allocation32_spill] sm:$0xff]  ;;  %v3562_v49 = vld [vmem:[#allocation74_spill] sm:$0xff]  ;;  %v3563_v48 = vld [vmem:[#allocation31_spill] sm:$0xff] }
 0x2db   :  { %1458 = vmatprep.subr.bf16.mxu0 %v3533_v40  ;;  %v807_v58 = vmul.f32 %v797_v32, %v3536_v44  ;;  %v810_v28 = vmul.f32 %v785_v8, %v3537_v23  ;;  %v809_v2 = vmul.f32 %v789_v9, %v3535_v56  ;;  %v1541_v61 = vpack.c.bf16 %v3554_v15, %v3553_v63  ;;  %v3561_v11 = vld [vmem:[#allocation76_spill] sm:$0xff]  ;;  %v3586_v41 = vld [vmem:[#allocation11_spill] sm:$0xff] }
 0x2dc   :  { %1528 = vmatpush1.bf16.msra.mxu1 %v1527_v19  ;;  %v3031_v59 = vpop.permute.xlu1 %1011  ;;  %v782_v51 = vpop.permute.xlu0 %781  ;;  %v1461_v27 = vpack.c.bf16 %v812_v35, %v808_v17  ;;  %v1471_v16 = vpack.c.bf16 %v3560_v22, %v3559_v29  ;;  %v3564_v35 = vld [vmem:[#allocation33_spill] sm:$0xff]  ;;  %v3565_v32 = vld [vmem:[#allocation72_spill] sm:$0xff] }
 0x2dd   :  { %1530 = vmatprep.subr.bf16.mxu1 %v3534_v0  ;;  %v786_v10 = vsel %vm167_vm4, %v2875_v21, %v782_v51  ;;  %v798_v33 = vsel %vm167_vm4, %v782_v51, %v2871_v60  ;;  %v3541_v21 = vld [vmem:[#allocation50_spill] sm:$0xff]  ;;  %v1535_v42 = vpack.c.bf16 %v813_v46, %v809_v2  ;;  %v1543_v8 = vpack.c.bf16 %v3564_v35, %v3563_v48  ;;  %v3566_v9 = vld [vmem:[#allocation8_spill] sm:$0xff]  ;;  %v3591_v48 = vld [vmem:[#allocation65_spill] sm:$0xff] }
 0x2de   :  { %v811_v18 = vmul.f32 %v798_v33, %v3536_v44  ;;  %v814_v25 = vmul.f32 %v786_v10, %v3537_v23  ;;  %1460 = vmatpush1.bf16.msra.mxu0 %v3540_v1  ;;  %v3543_v26 = vpack.c.bf16 %v3541_v21, %v3542_v62  ;;  %v3567_v46 = vld [vmem:[#allocation56_spill] sm:$0xff]  ;;  %v3568_v10 = vld [vmem:[#allocation54_spill] sm:$0xff]  ;;  %v3574_v62 = vld [vmem:[#allocation9_spill] sm:$0xff] }
 0x2df   :  { %1462 = vmatprep.subr.bf16.mxu0 %v1461_v27  ;;  %v3569_v33 = vpack.c.bf16 %v3567_v46, %v3568_v10  ;;  %v3583_v63 = vld [vmem:[#allocation80_spill] sm:$0xff]  ;;  %v3595_v46 = vld [vmem:[#allocation10_spill] sm:$0xff] }
 0x2e0   :  { %1532 = vmatpush1.bf16.msra.mxu1 %v3543_v26  ;;  %v828_v60 = vpop.permute.xlu1 %827  ;;  %v1463_v55 = vpack.c.bf16 %v811_v18, %v807_v58  ;;  %v3057_v39 = vpop.permute.xlu0 %1013  ;;  %v1533_v52 = vpack.c.bf16 %v814_v25, %v810_v28  ;;  %v3570_v58 = vld [vmem:[#allocation6_spill] sm:$0xff]  ;;  %v3571_v28 = vld [vmem:[#allocation60_spill] sm:$0xff] }
 0x2e1   :  { %v853_v14 = vsel %vm200_vm5, %v828_v60, %v3555_v38  ;;  %v857_v40 = vsel %vm200_vm5, %v3565_v32, %v828_v60  ;;  %v3572_v18 = vld [vmem:[#allocation58_spill] sm:$0xff]  ;;  %v3575_v60 = vld [vmem:[#allocation7_spill] sm:$0xff]  ;;  %v3592_v35 = vld [vmem:[#allocation64_spill] sm:$0xff] }
 0x2e2   :  { %1464 = vmatpush1.bf16.msra.mxu0 %v1463_v55  ;;  %1534 = vmatprep.subr.bf16.mxu1 %v1533_v52  ;;  %v872_v0 = vmul.f32 %v853_v14, %v3566_v9  ;;  %v3573_v25 = vpack.c.bf16 %v3571_v28, %v3572_v18  ;;  %v871_v1 = vmul.f32 %v857_v40, %v3570_v58  ;;  %v3585_v14 = vld [vmem:[#allocation75_spill] sm:$0xff]  ;;  %v3599_v18 = vld [vmem:[#allocation81_spill] sm:$0xff] }
 0x2e3   :  { %1466 = vmatprep.subr.bf16.mxu0 %v1465_v57  ;;  %v3578_v57 = vpack.c.bf16 %v3576_v34, %v3577_v47  ;;  %v3605_v47 = vld [vmem:[#allocation79_spill] sm:$0xff] }
 0x2e4   :  { %1536 = vmatpush1.bf16.msra.mxu1 %v1535_v42  ;;  %v844_v20 = vpop.permute.xlu1 %843  ;;  %v3063_v31 = vpop.permute.xlu0 %1029 }
 0x2e5   :  { %1538 = vmatprep.subr.bf16.mxu1 %v1537_v50  ;;  %v849_v27 = vsel %vm200_vm5, %v3555_v38, %v844_v20  ;;  %v861_v56 = vsel %vm200_vm5, %v844_v20, %v3565_v32  ;;  %v3580_v50 = vld [vmem:[#allocation59_spill] sm:$0xff]  ;;  %v3581_v20 = vld [vmem:[#allocation57_spill] sm:$0xff] }
 0x2e6   :  { %1468 = vmatpush1.bf16.msra.mxu0 %v3552_v5  ;;  %v873_v26 = vmul.f32 %v849_v27, %v3574_v62  ;;  %v874_v55 = vmul.f32 %v861_v56, %v3575_v60  ;;  %v3582_v7 = vpack.c.bf16 %v3580_v50, %v3581_v20  ;;  %v3594_v27 = vld [vmem:[#allocation14_spill] sm:$0xff] }
 0x2e7   :  { %1470 = vmatprep.subr.bf16.mxu0 %v1469_v54 }
 0x2e8   :  { %1540 = vmatpush1.bf16.msra.mxu1 %v3558_v4  ;;  %v892_v53 = vpop.permute.xlu1 %891 }
 0x2e9   :  { %1542 = vmatprep.subr.bf16.mxu1 %v1541_v61  ;;  %v830_v43 = vpop.permute.xlu0 %829  ;;  %v917_v36 = vsel %vm233_vm7, %v892_v53, %v3579_v37  ;;  %v3584_v61 = vld [vmem:[#allocation78_spill] sm:$0xff]  ;;  %v921_v3 = vsel %vm233_vm7, %v3585_v14, %v892_v53 }
 0x2ea   :  { %v854_v19 = vsel %vm200_vm5, %v830_v43, %v3561_v11  ;;  %v858_v17 = vsel %vm200_vm5, %v3562_v49, %v830_v43  ;;  %1472 = vmatpush1.bf16.msra.mxu0 %v1471_v16  ;;  %v936_v4 = vmul.f32 %v917_v36, %v3586_v41  ;;  %v3587_v16 = vld [vmem:[#allocation62_spill] sm:$0xff] }
 0x2eb   :  { %v876_v51 = vmul.f32 %v854_v19, %v3566_v9  ;;  %1474 = vmatprep.subr.bf16.mxu0 %v3569_v33  ;;  %v875_v23 = vmul.f32 %v858_v17, %v3570_v58  ;;  %v3596_v58 = vld [vmem:[#allocation34_spill] sm:$0xff] }
 0x2ec   :  { %1544 = vmatpush1.bf16.msra.mxu1 %v1543_v8  ;;  %v908_v44 = vpop.permute.xlu1 %907  ;;  %v3593_v8 = vpack.c.bf16 %v3591_v48, %v3592_v35 }
 0x2ed   :  { %1546 = vmatprep.subr.bf16.mxu1 %v3573_v25  ;;  %v846_v30 = vpop.permute.xlu0 %845  ;;  %v1477_v13 = vpack.c.bf16 %v876_v51, %v872_v0  ;;  %v1479_v54 = vpack.c.bf16 %v875_v23, %v871_v1  ;;  %v913_v29 = vsel %vm233_vm7, %v3579_v37, %v908_v44  ;;  %v925_v22 = vsel %vm233_vm7, %v908_v44, %v3585_v14  ;;  %v3597_v23 = vld [vmem:[#allocation61_spill] sm:$0xff]  ;;  %v3606_v37 = vld [vmem:[#allocation15_spill] sm:$0xff] }
 0x2ee   :  { %v850_v2 = vsel %vm200_vm5, %v3561_v11, %v846_v30  ;;  %v862_v21 = vsel %vm200_vm5, %v846_v30, %v3562_v49  ;;  %1476 = vmatpush1.bf16.msra.mxu0 %v3578_v57  ;;  %v3588_v11 = vld [vmem:[#allocation36_spill] sm:$0xff]  ;;  %v3590_v49 = vld [vmem:[#allocation17_spill] sm:$0xff]  ;;  %v937_v56 = vmul.f32 %v913_v29, %v3594_v27  ;;  %v938_v10 = vmul.f32 %v925_v22, %v3595_v46  ;;  %v3600_v30 = vld [vmem:[#allocation35_spill] sm:$0xff] }
 0x2ef   :  { %v877_v52 = vmul.f32 %v850_v2, %v3574_v62  ;;  %v878_v42 = vmul.f32 %v862_v21, %v3575_v60  ;;  %1478 = vmatprep.subr.bf16.mxu0 %v1477_v13  ;;  %v3589_v19 = vpack.c.bf16 %v3587_v16, %v3588_v11  ;;  %v935_v9 = vmul.f32 %v921_v3, %v3590_v49  ;;  %v3601_v13 = vld [vmem:[#allocation63_spill] sm:$0xff]  ;;  %v3614_v29 = vld [vmem:[#allocation16_spill] sm:$0xff]  ;;  %v3615_v16 = vld [vmem:[#allocation13_spill] sm:$0xff] }
 0x2f0   :  { %1548 = vmatpush1.bf16.msra.mxu1 %v3582_v7  ;;  %v956_v45 = vpop.permute.xlu1 %955  ;;  %v3598_v28 = vpack.c.bf16 %v3596_v58, %v3597_v23  ;;  %v3602_v1 = vpack.c.bf16 %v3600_v30, %v3601_v13  ;;  %v3623_v30 = vld [vmem:[#allocation21_spill] sm:$0xff] }
 0x2f1   :  { %v1551_v12 = vpack.c.bf16 %v877_v52, %v873_v26  ;;  %v894_v6 = vpop.permute.xlu0 %893  ;;  %v1549_v5 = vpack.c.bf16 %v878_v42, %v874_v55  ;;  %v981_v25 = vsel %vm266_vm6, %v956_v45, %v3599_v18  ;;  %v3603_v55 = vld [vmem:[#allocation83_spill] sm:$0xff]  ;;  %v3604_v42 = vld [vmem:[#allocation82_spill] sm:$0xff]  ;;  %v985_v57 = vsel %vm266_vm6, %v3605_v47, %v956_v45 }
 0x2f2   :  { %v918_v15 = vsel %vm233_vm7, %v894_v6, %v3583_v63  ;;  %v922_v38 = vsel %vm233_vm7, %v3584_v61, %v894_v6  ;;  %1480 = vmatpush1.bf16.msra.mxu0 %v1479_v54  ;;  %v1000_v36 = vmul.f32 %v981_v25, %v3606_v37  ;;  %v3607_v54 = vld [vmem:[#allocation66_spill] sm:$0xff] }
 0x2f3   :  { %v940_v43 = vmul.f32 %v918_v15, %v3586_v41  ;;  %1550 = vmatprep.subr.bf16.mxu1 %v1549_v5  ;;  %1482 = vmatprep.subr.bf16.mxu0 %v3589_v19  ;;  %v939_v17 = vmul.f32 %v922_v38, %v3590_v49  ;;  %v3610_v5 = vld [vmem:[#allocation12_spill] sm:$0xff]  ;;  %v3611_v15 = vld [vmem:[#allocation69_spill] sm:$0xff]  ;;  %v3616_v49 = vld [vmem:[#allocation38_spill] sm:$0xff] }
 0x2f4   :  { %1552 = vmatpush1.bf16.msra.mxu1 %v1551_v12  ;;  %v972_v53 = vpop.permute.xlu1 %971  ;;  %v3608_v12 = vld [vmem:[#allocation40_spill] sm:$0xff]  ;;  %v999_v41 = vmul.f32 %v985_v57, %v3610_v5  ;;  %v3622_v25 = vld [vmem:[#allocation42_spill] sm:$0xff]  ;;  %v3628_v57 = vld [vmem:[#allocation19_spill] sm:$0xff] }
 0x2f5   :  { %1554 = vmatprep.subr.bf16.mxu1 %v3593_v8  ;;  %v910_v32 = vpop.permute.xlu0 %909  ;;  %v1485_v40 = vpack.c.bf16 %v940_v43, %v936_v4  ;;  %v1487_v21 = vpack.c.bf16 %v939_v17, %v935_v9  ;;  %v977_v20 = vsel %vm266_vm6, %v3599_v18, %v972_v53  ;;  %v989_v7 = vsel %vm266_vm6, %v972_v53, %v3605_v47  ;;  %v3617_v17 = vld [vmem:[#allocation37_spill] sm:$0xff]  ;;  %v3619_v8 = vld [vmem:[#allocation39_spill] sm:$0xff] }
 0x2f6   :  { %v914_v0 = vsel %vm233_vm7, %v3583_v63, %v910_v32  ;;  %v926_v51 = vsel %vm233_vm7, %v910_v32, %v3584_v61  ;;  %1484 = vmatpush1.bf16.msra.mxu0 %v3598_v28  ;;  %v3609_v6 = vpack.c.bf16 %v3607_v54, %v3608_v12  ;;  %v3612_v61 = vld [vmem:[#allocation68_spill] sm:$0xff]  ;;  %v1001_v22 = vmul.f32 %v977_v20, %v3614_v29  ;;  %v3620_v32 = vld [vmem:[#allocation67_spill] sm:$0xff]  ;;  %v3630_v54 = vld [vmem:[#allocation41_spill] sm:$0xff] }
 0x2f7   :  { %v941_v33 = vmul.f32 %v914_v0, %v3594_v27  ;;  %v942_v44 = vmul.f32 %v926_v51, %v3595_v46  ;;  %1486 = vmatprep.subr.bf16.mxu0 %v1485_v40  ;;  %v3613_v38 = vpack.c.bf16 %v3611_v15, %v3612_v61  ;;  %v1002_v11 = vmul.f32 %v989_v7, %v3615_v16  ;;  %v3629_v7 = vld [vmem:[#allocation43_spill] sm:$0xff] }
 0x2f8   :  { %1556 = vmatpush1.bf16.msra.mxu1 %v3602_v1  ;;  %v1020_v2 = vpop.permute.xlu1 %1019  ;;  %v3618_v48 = vpack.c.bf16 %v3616_v49, %v3617_v17  ;;  %v3621_v40 = vpack.c.bf16 %v3619_v8, %v3620_v32  ;;  %v3624_v13 = vpack.c.bf16 %v3622_v25, %v3623_v30  ;;  %v1601_v1 = vld [vmem:[%s3273_s2 + $0x20] ss:$0 sm:$0xff]  ;;  %v3631_v12 = vpack.c.bf16 %v3629_v7, %v3630_v54  ;;  %v1072_v15 = vld [vmem:[%s3275_s5 + $0x8] sm:$0xf] }
 0x2f9   :  { %v1559_v62 = vpack.c.bf16 %v941_v33, %v937_v56  ;;  %v958_v26 = vpop.permute.xlu0 %957  ;;  %v1557_v60 = vpack.c.bf16 %v942_v44, %v938_v10  ;;  %v1049_v46 = vsel %vm299_vm8, %v3031_v59, %v1020_v2  ;;  %v1600_v44 = vld [vmem:[%s3273_s2 + $0x28] ss:$0 sm:$0xff] }
 0x2fa   :  { %v982_v52 = vsel %vm266_vm6, %v958_v26, %v3603_v55  ;;  %v986_v34 = vsel %vm266_vm6, %v3604_v42, %v958_v26  ;;  %1488 = vmatpush1.bf16.msra.mxu0 %v1487_v21  ;;  %v3625_v21 = vld [vmem:[#allocation71_spill] sm:$0xff] }
 0x2fb   :  { %v1004_v50 = vmul.f32 %v982_v52, %v3606_v37  ;;  %1558 = vmatprep.subr.bf16.mxu1 %v1557_v60  ;;  %1490 = vmatprep.subr.bf16.mxu0 %v3609_v6  ;;  %v1003_v63 = vmul.f32 %v986_v34, %v3610_v5  ;;  %v1063_v52 = vmul.f32 %v1601_v1, %v1049_v46  ;;  %v1603_v37 = vld [vmem:[%s3273_s2 + $0x38] ss:$0 sm:$0xff]  ;;  %v3633_v6 = vld [vmem:[#allocation20_spill] sm:$0xff] }
 0x2fc   :  { %1560 = vmatpush1.bf16.msra.mxu1 %v1559_v62  ;;  %v1028_v45 = vpop.permute.xlu1 %1027  ;;  %v3626_v62 = vld [vmem:[#allocation18_spill] sm:$0xff] }
 0x2fd   :  { %1562 = vmatprep.subr.bf16.mxu1 %v3613_v38  ;;  %v974_v14 = vpop.permute.xlu0 %973  ;;  %v1493_v3 = vpack.c.bf16 %v1004_v50, %v1000_v36  ;;  %v1045_v35 = vsel %vm299_vm8, %v1020_v2, %v1028_v45  ;;  %v1495_v0 = vpack.c.bf16 %v1003_v63, %v999_v41  ;;  %v3627_v26 = vpack.c.bf16 %v3625_v21, %v3626_v62 }
 0x2fe   :  { %v978_v4 = vsel %vm266_vm6, %v3603_v55, %v974_v14  ;;  %v990_v43 = vsel %vm266_vm6, %v974_v14, %v3604_v42  ;;  %1492 = vmatpush1.bf16.msra.mxu0 %v3618_v48  ;;  %v1064_v58 = vmul.f32 %v1600_v44, %v1045_v35  ;;  %v3635_v63 = vmov 0.0  }
 0x2ff   :  { %v1005_v19 = vmul.f32 %v978_v4, %v3614_v29  ;;  %v1006_v53 = vmul.f32 %v990_v43, %v3615_v16  ;;  %1494 = vmatprep.subr.bf16.mxu0 %v1493_v3 }
 0x300   :  { %1564 = vmatpush1.bf16.msra.mxu1 %v3621_v40  ;;  %v1036_v9 = vpop.permute.xlu1 %1035 }
 0x301   :  { %v1567_v51 = vpack.c.bf16 %v1005_v19, %v1001_v22  ;;  %v1022_v27 = vpop.permute.xlu0 %1021  ;;  %v1565_v56 = vpack.c.bf16 %v1006_v53, %v1002_v11  ;;  %v1041_v23 = vsel %vm299_vm8, %v1028_v45, %v1036_v9  ;;  %v1053_v18 = vsel %vm299_vm8, %v1036_v9, %v3031_v59  ;;  %v1602_v59 = vld [vmem:[%s3273_s2 + $0x30] ss:$0 sm:$0xff] }
 0x302   :  { %v1046_v10 = vsel %vm299_vm8, %v1022_v27, %v3063_v31  ;;  %v1050_v33 = vsel %vm299_vm8, %v3057_v39, %v1022_v27  ;;  %1496 = vmatpush1.bf16.msra.mxu0 %v1495_v0  ;;  %v1065_v42 = vmul.f32 %v1602_v59, %v1041_v23  ;;  %v1066_v36 = vmul.f32 %v1603_v37, %v1053_v18 }
 0x303   :  { %v1068_v28 = vmul.f32 %v1600_v44, %v1046_v10  ;;  %1566 = vmatprep.subr.bf16.mxu1 %v1565_v56  ;;  %1498 = vmatprep.subr.bf16.mxu0 %v3624_v13  ;;  %v1067_v2 = vmul.f32 %v1601_v1, %v1050_v33 }
 0x304   :  { %1568 = vmatpush1.bf16.msra.mxu1 %v1567_v51 }
 0x305   :  { %1570 = vmatprep.subr.bf16.mxu1 %v3627_v26  ;;  %v1038_v60 = vpop.permute.xlu0 %1037  ;;  %v1501_v55 = vpack.c.bf16 %v1068_v28, %v1064_v58  ;;  %1151 = vmatmul.mubr.f32.vlgmr.msra.gmra.mrb[8].mxu0 %v3628_v57 }
 0x306   :  { %v1042_v34 = vsel %vm299_vm8, %v3063_v31, %v1038_v60  ;;  %v1054_v47 = vsel %vm299_vm8, %v1038_v60, %v3057_v39  ;;  %1500 = vmatpush1.bf16.msra.mxu0 %v3631_v12  ;;  %v3632_v31 = vld [vmem:[#allocation70_spill] sm:$0xff]  ;;  %v1503_v39 = vpack.c.bf16 %v1067_v2, %v1063_v52  ;;  %1221 = vmatprep.mubr.f32.mxu0 %v3635_v63 }
 0x307   :  { %v1069_v50 = vmul.f32 %v1602_v59, %v1042_v34  ;;  %v1070_v20 = vmul.f32 %v1603_v37, %v1054_v47  ;;  %1293 = vmatmul.mubr.f32.vlgmr.msra.gmra.mrb[8].mxu1 %v3628_v57  ;;  %1502 = vmatprep.subr.bf16.mxu0 %v1501_v55  ;;  %v3634_v24 = vpack.c.bf16 %v3632_v31, %v3633_v6 }
 0x308   :  { %1363 = vmatprep.mubr.f32.mxu1 %v3635_v63 }
 0x309   :  { %1572 = vmatpush1.bf16.msra.mxu1 %v3634_v24  ;;  %v1575_v45 = vpack.c.bf16 %v1069_v50, %v1065_v42  ;;  %v1573_v5 = vpack.c.bf16 %v1070_v20, %v1066_v36 }
 0x30a   :  { %1504 = vmatpush1.bf16.msra.mxu0 %v1503_v39 }
 0x30b   :  { %1574 = vmatprep.subr.bf16.mxu1 %v1573_v5 }
 0x30d   :  { %1576 = vmatpush1.bf16.msra.mxu1 %v1575_v45  ;;  %1398 = vmatmul.mubr.msk.f32.vlgmr.msra.gmra.mrb[8].mxu0 %vm1083_vm10, %v1072_v15 }
 0x310   :  { %1399 = vmatmul.mubr.msk.f32.vlgmr.msra.gmra.mrb[8].mxu1 %vm1083_vm10, %v1072_v15 }
 0x311   :  { %v1077_v61 = vpop.permute.xlu1 %1076 }
 0x3e0   :  { %v1223_v38 = vpop.f32.mrb[8].mxu0 }
 0x3e1   :  { %v1577_v14 = vadd.f32 %v1223_v38, %v1077_v61  ;;  %v1225_v3 = vpop.f32.mrb[9].mxu0 }
 0x3e2   :  { %v1578_v4 = vadd.f32 %v1225_v3, %v1077_v61 }
 0x3e3   :  { %v1365_v41 = vpop.f32.mrb[8].mxu1 }
 0x3e4   :  { %v1579_v43 = vadd.f32 %v1365_v41, %v1077_v61  ;;  %v1367_v29 = vpop.f32.mrb[9].mxu1  ;;  %v1372_v16 = vcombine.low %v1577_v14, %v1578_v4 }
 0x3e5   :  { %v1580_v22 = vadd.f32 %v1367_v29, %v1077_v61 }
 0x3e6   :  { %1374 = vst [vmem:[%s3277_s7] sm:$0xff] %v1372_v16 }
 0x3e7   :  { %v1377_v11 = vcombine.low %v1579_v43, %v1580_v22 }
 0x3e9   :  { %1400 = vst [vmem:[%s3277_s7 + $0x8] sm:$0xff] %v1377_v11 }

</bundles_post_ra>
